<compile_context>
chip_gen: v7x
topology: tpu7x:2x2x1
jax: 0.10.0
libtpu: 0.0.40
codegen_flags: <defaults>
</compile_context>

<pallas_src>
import jax
import jax.numpy as jnp
from jax.experimental import pallas as pl
from jax.experimental.pallas import tpu as pltpu

EPS = 1e-5
NEG_SLOPE = 0.2                     # LeakyReLU slope
NUM_LAYERS = 8                      # 4 encoder + 4 decoder Linear layers
ACT_LAYERS = (0, 1, 2, 4, 5, 6)     # layers followed by BatchNorm1d + LeakyReLU
HID = 128                           # hidden lane width (real widths <= 64, padded)


def _round_up(x, m):
    return ((x + m - 1) // m) * m


# ----------------------------------------------------------------------------
# Kernel: one batch tile through all 8 BN-folded Linear layers.
#   x_ref     : (tile, D)      f32
#   w_in_ref  : (D, HID)       bf16   layer 0
#   w_mid_ref : (6, HID, HID)  bf16   layers 1..6
#   w_out_ref : (HID, D)       bf16   layer 7
#   b_hid_ref : (7, HID)       f32    biases of layers 0..6 (BN-folded)
#   b_out_ref : (1, D)         f32    bias of layer 7
# ----------------------------------------------------------------------------
def autoencoder_kernel(x_ref, w_in_ref, w_mid_ref, w_out_ref,
                       b_hid_ref, b_out_ref, out_ref):
    b_hid = b_hid_ref[...]                                      # (7, HID) once

    # Layer 0: (tile, D) @ (D, HID); has BN + LeakyReLU.
    h = jnp.dot(x_ref[...].astype(jnp.bfloat16), w_in_ref[...],
                preferred_element_type=jnp.float32) + b_hid[0]
    h = jnp.maximum(h, NEG_SLOPE * h)                           # LeakyReLU(0.2)

    # Layers 1..6: (tile, HID) @ (HID, HID), statically unrolled.
    for l in range(6):
        layer_idx = l + 1
        h = jnp.dot(h.astype(jnp.bfloat16), w_mid_ref[l],
                    preferred_element_type=jnp.float32) + b_hid[layer_idx]
        if layer_idx in ACT_LAYERS:                             # not layer 3
            h = jnp.maximum(h, NEG_SLOPE * h)
        # Dropout is identity in eval mode.

    # Layer 7: (tile, HID) @ (HID, D); no activation.
    y = jnp.dot(h.astype(jnp.bfloat16), w_out_ref[...],
                preferred_element_type=jnp.float32) + b_out_ref[...]
    out_ref[...] = y.astype(out_ref.dtype)


# ----------------------------------------------------------------------------
# Wrapper
# ----------------------------------------------------------------------------
def autoencoder_forward(x, params, *, tile_n=1024):
    """x: (N, D) f32.  params: output of fold_and_pack()."""
    w_in, w_mid, w_out, b_hid, b_out = params
    N, D = x.shape
    assert w_in.shape == (D, HID) and w_out.shape == (HID, D)

    # Batch tile: multiple of 8 sublanes.  For small N, clamp so the grid has
    # >= 2 steps (both v7x TensorCores get work; neutral on v5e/v6e).
    tile = min(tile_n, _round_up(pl.cdiv(N, 2), 8))
    tile = max(8, _round_up(tile, 8))
    n_pad = _round_up(N, tile)

    x_p = x if n_pad == N else jnp.zeros((n_pad, D), x.dtype).at[:N].set(x)

    out = pl.pallas_call(
        autoencoder_kernel,
        out_shape=jax.ShapeDtypeStruct((n_pad, D), x.dtype),
        grid=(n_pad // tile,),
        in_specs=[
            # batch-tiled input, full (unpadded) last dim D
            pl.BlockSpec((tile, D), lambda i: (i, 0)),
            # weight / bias slabs: constant block index -> DMA'd once, resident
            pl.BlockSpec((D, HID), lambda i: (0, 0)),
            pl.BlockSpec((6, HID, HID), lambda i: (0, 0, 0)),
            pl.BlockSpec((HID, D), lambda i: (0, 0)),
            pl.BlockSpec((7, HID), lambda i: (0, 0)),
            pl.BlockSpec((1, D), lambda i: (0, 0)),
        ],
        out_specs=pl.BlockSpec((tile, D), lambda i: (i, 0)),
        compiler_params=pltpu.CompilerParams(
            dimension_semantics=("parallel",),      # megacore-shard batch tiles
            vmem_limit_bytes=32 * 1024 * 1024,
        ),
    )(x_p, w_in, w_mid, w_out, b_hid, b_out)

    return out[:N]


# ----------------------------------------------------------------------------
# Parameters (deterministic, shapes per the PyTorch module)
# ----------------------------------------------------------------------------
def init_raw_params(key, input_dim):
    dims = [(input_dim, 64), (64, 32), (32, 16), (16, 8),      # encoder
            (8, 16), (16, 32), (32, 64), (64, input_dim)]      # decoder
    layers = []
    for i, (din, dout) in enumerate(dims):
        key, kw, kb, kg, kbe, km, kv = jax.random.split(key, 7)
        bound = 1.0 / float(din) ** 0.5
        layer = {
            # stored as (in, out) == PyTorch W.T, so y = x @ W + b
            "w": jax.random.uniform(kw, (din, dout), jnp.float32, -bound, bound),
            "b": jax.random.uniform(kb, (dout,), jnp.float32, -bound, bound),
        }
        if i in ACT_LAYERS:                          # BatchNorm1d running stats
            layer["gamma"] = jax.random.uniform(kg, (dout,), jnp.float32, 0.5, 1.5)
            layer["beta"] = 0.1 * jax.random.normal(kbe, (dout,), jnp.float32)
            layer["mean"] = 0.1 * jax.random.normal(km, (dout,), jnp.float32)
            layer["var"] = jax.random.uniform(kv, (dout,), jnp.float32, 0.5, 1.5)
        layers.append(layer)
    return layers


def fold_and_pack(raw_layers, input_dim):
    """Fold eval-mode BN into each Linear, pack into bf16 slabs.

    Only layer 0's K dim and layer 7's N dim carry the real input_dim; hidden
    layers are zero-padded to HID=128 (padded columns/bias entries are zero,
    so padded lanes of h stay exactly zero through the whole chain).
    """
    D = input_dim
    folded = []
    for layer in raw_layers:
        w, b = layer["w"], layer["b"]
        if "gamma" in layer:
            s = layer["gamma"] / jnp.sqrt(layer["var"] + EPS)
            t = layer["beta"] - layer["mean"] * s
            w = w * s[None, :]
            b = b * s + t
        folded.append((w, b))

    w0 = folded[0][0]                                           # (D, 64)
    w_in = jnp.zeros((D, HID), jnp.float32).at[:, :w0.shape[1]].set(w0)

    w_mid = jnp.zeros((6, HID, HID), jnp.float32)
    for i in range(6):
        w = folded[i + 1][0]
        w_mid = w_mid.at[i, :w.shape[0], :w.shape[1]].set(w)

    w7 = folded[7][0]                                           # (64, D)
    w_out = jnp.zeros((HID, D), jnp.float32).at[:w7.shape[0], :].set(w7)

    b_hid = jnp.zeros((7, HID), jnp.float32)
    for i in range(7):
        b = folded[i][1]
        b_hid = b_hid.at[i, :b.shape[0]].set(b)
    b_out = folded[7][1].reshape(1, D)

    return (w_in.astype(jnp.bfloat16),
            w_mid.astype(jnp.bfloat16),
            w_out.astype(jnp.bfloat16),
            b_hid,                       # biases kept f32 (tiny, better accuracy)
            b_out)


# ----------------------------------------------------------------------------
# Pure-JAX f32 reference (unfolded Linear -> BN(eval) -> LeakyReLU structure)
# ----------------------------------------------------------------------------
def reference_forward(x, raw_layers):
    h = x
    for layer in raw_layers:
        h = h @ layer["w"] + layer["b"]
        if "gamma" in layer:
            h = (h - layer["mean"]) / jnp.sqrt(layer["var"] + EPS) \
                * layer["gamma"] + layer["beta"]
            h = jnp.where(h > 0, h, NEG_SLOPE * h)
    return h


if __name__ == "__main__":
    key = jax.random.PRNGKey(0)
    key, kx = jax.random.split(key)

    B, INPUT_DIM = 256, 32
    raw = init_raw_params(key, INPUT_DIM)
    params = fold_and_pack(raw, INPUT_DIM)
    x = jax.random.normal(kx, (B, INPUT_DIM), jnp.float32)

    # With B=256 the tile clamp gives tile=128 -> grid=(2,) (both v7x TCs busy).
    y = autoencoder_forward(x, params)
    jax.block_until_ready(y)

    y_ref = reference_forward(x, raw)
    assert y.shape == (B, INPUT_DIM), y.shape
    # bf16 weights/activations through 8 matmuls (f32 accumulation): relaxed tol.
    assert jnp.allclose(y, y_ref, atol=5e-2, rtol=5e-2), "mismatch vs JAX reference"

    # TODO(synk): training-mode BatchNorm (batch statistics) and stochastic
    # Dropout are not implemented; this kernel reproduces eval-mode forward.
    print("KERNEL_OK")
</pallas_src>

<mosaic_0001>
module attributes {stable_mosaic.version = 11 : i64} {
  func.func @autoencoder_kernel(%arg0: i32, %arg1: memref<128x32xf32, #tpu.memory_space<vmem>>, %arg2: memref<32x128xbf16, #tpu.memory_space<vmem>>, %arg3: memref<6x128x128xbf16, #tpu.memory_space<vmem>>, %arg4: memref<128x32xbf16, #tpu.memory_space<vmem>>, %arg5: memref<7x128xf32, #tpu.memory_space<vmem>>, %arg6: memref<1x32xf32, #tpu.memory_space<vmem>>, %arg7: memref<128x32xf32, #tpu.memory_space<vmem>>) attributes {dimension_semantics = [#tpu.dimension_semantics<parallel>], iteration_bounds = array<i64: 2>, scalar_prefetch = 0 : i64, scratch_operands = 0 : i64, tpu.core_type = #tpu.core_type<tc>, window_params = [{transform_indices = @transform_0, window_bounds = array<i64: 128, 32>}, {pipeline_mode = #tpu.pipeline_mode<synchronous>, transform_indices = @transform_1, window_bounds = array<i64: 32, 128>}, {pipeline_mode = #tpu.pipeline_mode<synchronous>, transform_indices = @transform_2, window_bounds = array<i64: 6, 128, 128>}, {pipeline_mode = #tpu.pipeline_mode<synchronous>, transform_indices = @transform_3, window_bounds = array<i64: 128, 32>}, {pipeline_mode = #tpu.pipeline_mode<synchronous>, transform_indices = @transform_4, window_bounds = array<i64: 7, 128>}, {pipeline_mode = #tpu.pipeline_mode<synchronous>, transform_indices = @transform_5, window_bounds = array<i64: 1, 32>}, {transform_indices = @transform_6, window_bounds = array<i64: 128, 32>}]} {
    %c0 = arith.constant 0 : index
    %c0_0 = arith.constant 0 : index
    %0 = vector.load %arg5[%c0, %c0_0] : memref<7x128xf32, #tpu.memory_space<vmem>>, vector<7x128xf32>
    %c0_1 = arith.constant 0 : index
    %c0_2 = arith.constant 0 : index
    %1 = vector.load %arg1[%c0_1, %c0_2] : memref<128x32xf32, #tpu.memory_space<vmem>>, vector<128x32xf32>
    %2 = arith.truncf %1 : vector<128x32xf32> to vector<128x32xbf16>
    %c0_3 = arith.constant 0 : index
    %c0_4 = arith.constant 0 : index
    %3 = vector.load %arg2[%c0_3, %c0_4] : memref<32x128xbf16, #tpu.memory_space<vmem>>, vector<32x128xbf16>
    %cst = arith.constant dense<0.000000e+00> : vector<128x128xf32>
    %4 = tpu.matmul %2, %3, %cst {dimension_numbers = #tpu.dot_dimension_numbers<[1], [0], [0], [1], [0, 0, 1, 1], [], []>} : vector<128x32xbf16>, vector<32x128xbf16>, vector<128x128xf32> -> vector<128x128xf32>
    %5 = vector.extract_strided_slice %0 {offsets = [0, 0], sizes = [1, 128], strides = [1, 1]} : vector<7x128xf32> to vector<1x128xf32>
    %6 = vector.shape_cast %5 : vector<1x128xf32> to vector<128xf32>
    %7 = vector.shape_cast %6 : vector<128xf32> to vector<1x128xf32>
    %8 = vector.broadcast %7 : vector<1x128xf32> to vector<128x128xf32>
    %9 = arith.addf %4, %8 : vector<128x128xf32>
    %cst_5 = arith.constant 2.000000e-01 : f32
    %10 = vector.broadcast %cst_5 : f32 to vector<128x128xf32>
    %11 = arith.mulf %10, %9 : vector<128x128xf32>
    %12 = arith.maximumf %9, %11 : vector<128x128xf32>
    %13 = arith.truncf %12 : vector<128x128xf32> to vector<128x128xbf16>
    %c0_6 = arith.constant 0 : index
    %c0_7 = arith.constant 0 : index
    %c0_8 = arith.constant 0 : index
    %14 = vector.load %arg3[%c0_6, %c0_7, %c0_8] : memref<6x128x128xbf16, #tpu.memory_space<vmem>>, vector<1x128x128xbf16>
    %15 = vector.shape_cast %14 : vector<1x128x128xbf16> to vector<128x128xbf16>
    %cst_9 = arith.constant dense<0.000000e+00> : vector<128x128xf32>
    %16 = tpu.matmul %13, %15, %cst_9 {dimension_numbers = #tpu.dot_dimension_numbers<[1], [0], [0], [1], [0, 0, 1, 1], [], []>} : vector<128x128xbf16>, vector<128x128xbf16>, vector<128x128xf32> -> vector<128x128xf32>
    %17 = vector.extract_strided_slice %0 {offsets = [1, 0], sizes = [1, 128], strides = [1, 1]} : vector<7x128xf32> to vector<1x128xf32>
    %18 = vector.shape_cast %17 : vector<1x128xf32> to vector<128xf32>
    %19 = vector.shape_cast %18 : vector<128xf32> to vector<1x128xf32>
    %20 = vector.broadcast %19 : vector<1x128xf32> to vector<128x128xf32>
    %21 = arith.addf %16, %20 : vector<128x128xf32>
    %cst_10 = arith.constant 2.000000e-01 : f32
    %22 = vector.broadcast %cst_10 : f32 to vector<128x128xf32>
    %23 = arith.mulf %22, %21 : vector<128x128xf32>
    %24 = arith.maximumf %21, %23 : vector<128x128xf32>
    %25 = arith.truncf %24 : vector<128x128xf32> to vector<128x128xbf16>
    %c1 = arith.constant 1 : index
    %c0_11 = arith.constant 0 : index
    %c0_12 = arith.constant 0 : index
    %26 = vector.load %arg3[%c1, %c0_11, %c0_12] : memref<6x128x128xbf16, #tpu.memory_space<vmem>>, vector<1x128x128xbf16>
    %27 = vector.shape_cast %26 : vector<1x128x128xbf16> to vector<128x128xbf16>
    %cst_13 = arith.constant dense<0.000000e+00> : vector<128x128xf32>
    %28 = tpu.matmul %25, %27, %cst_13 {dimension_numbers = #tpu.dot_dimension_numbers<[1], [0], [0], [1], [0, 0, 1, 1], [], []>} : vector<128x128xbf16>, vector<128x128xbf16>, vector<128x128xf32> -> vector<128x128xf32>
    %29 = vector.extract_strided_slice %0 {offsets = [2, 0], sizes = [1, 128], strides = [1, 1]} : vector<7x128xf32> to vector<1x128xf32>
    %30 = vector.shape_cast %29 : vector<1x128xf32> to vector<128xf32>
    %31 = vector.shape_cast %30 : vector<128xf32> to vector<1x128xf32>
    %32 = vector.broadcast %31 : vector<1x128xf32> to vector<128x128xf32>
    %33 = arith.addf %28, %32 : vector<128x128xf32>
    %cst_14 = arith.constant 2.000000e-01 : f32
    %34 = vector.broadcast %cst_14 : f32 to vector<128x128xf32>
    %35 = arith.mulf %34, %33 : vector<128x128xf32>
    %36 = arith.maximumf %33, %35 : vector<128x128xf32>
    %37 = arith.truncf %36 : vector<128x128xf32> to vector<128x128xbf16>
    %c2 = arith.constant 2 : index
    %c0_15 = arith.constant 0 : index
    %c0_16 = arith.constant 0 : index
    %38 = vector.load %arg3[%c2, %c0_15, %c0_16] : memref<6x128x128xbf16, #tpu.memory_space<vmem>>, vector<1x128x128xbf16>
    %39 = vector.shape_cast %38 : vector<1x128x128xbf16> to vector<128x128xbf16>
    %cst_17 = arith.constant dense<0.000000e+00> : vector<128x128xf32>
    %40 = tpu.matmul %37, %39, %cst_17 {dimension_numbers = #tpu.dot_dimension_numbers<[1], [0], [0], [1], [0, 0, 1, 1], [], []>} : vector<128x128xbf16>, vector<128x128xbf16>, vector<128x128xf32> -> vector<128x128xf32>
    %41 = vector.extract_strided_slice %0 {offsets = [3, 0], sizes = [1, 128], strides = [1, 1]} : vector<7x128xf32> to vector<1x128xf32>
    %42 = vector.shape_cast %41 : vector<1x128xf32> to vector<128xf32>
    %43 = vector.shape_cast %42 : vector<128xf32> to vector<1x128xf32>
    %44 = vector.broadcast %43 : vector<1x128xf32> to vector<128x128xf32>
    %45 = arith.addf %40, %44 : vector<128x128xf32>
    %46 = arith.truncf %45 : vector<128x128xf32> to vector<128x128xbf16>
    %c3 = arith.constant 3 : index
    %c0_18 = arith.constant 0 : index
    %c0_19 = arith.constant 0 : index
    %47 = vector.load %arg3[%c3, %c0_18, %c0_19] : memref<6x128x128xbf16, #tpu.memory_space<vmem>>, vector<1x128x128xbf16>
    %48 = vector.shape_cast %47 : vector<1x128x128xbf16> to vector<128x128xbf16>
    %cst_20 = arith.constant dense<0.000000e+00> : vector<128x128xf32>
    %49 = tpu.matmul %46, %48, %cst_20 {dimension_numbers = #tpu.dot_dimension_numbers<[1], [0], [0], [1], [0, 0, 1, 1], [], []>} : vector<128x128xbf16>, vector<128x128xbf16>, vector<128x128xf32> -> vector<128x128xf32>
    %50 = vector.extract_strided_slice %0 {offsets = [4, 0], sizes = [1, 128], strides = [1, 1]} : vector<7x128xf32> to vector<1x128xf32>
    %51 = vector.shape_cast %50 : vector<1x128xf32> to vector<128xf32>
    %52 = vector.shape_cast %51 : vector<128xf32> to vector<1x128xf32>
    %53 = vector.broadcast %52 : vector<1x128xf32> to vector<128x128xf32>
    %54 = arith.addf %49, %53 : vector<128x128xf32>
    %cst_21 = arith.constant 2.000000e-01 : f32
    %55 = vector.broadcast %cst_21 : f32 to vector<128x128xf32>
    %56 = arith.mulf %55, %54 : vector<128x128xf32>
    %57 = arith.maximumf %54, %56 : vector<128x128xf32>
    %58 = arith.truncf %57 : vector<128x128xf32> to vector<128x128xbf16>
    %c4 = arith.constant 4 : index
    %c0_22 = arith.constant 0 : index
    %c0_23 = arith.constant 0 : index
    %59 = vector.load %arg3[%c4, %c0_22, %c0_23] : memref<6x128x128xbf16, #tpu.memory_space<vmem>>, vector<1x128x128xbf16>
    %60 = vector.shape_cast %59 : vector<1x128x128xbf16> to vector<128x128xbf16>
    %cst_24 = arith.constant dense<0.000000e+00> : vector<128x128xf32>
    %61 = tpu.matmul %58, %60, %cst_24 {dimension_numbers = #tpu.dot_dimension_numbers<[1], [0], [0], [1], [0, 0, 1, 1], [], []>} : vector<128x128xbf16>, vector<128x128xbf16>, vector<128x128xf32> -> vector<128x128xf32>
    %62 = vector.extract_strided_slice %0 {offsets = [5, 0], sizes = [1, 128], strides = [1, 1]} : vector<7x128xf32> to vector<1x128xf32>
    %63 = vector.shape_cast %62 : vector<1x128xf32> to vector<128xf32>
    %64 = vector.shape_cast %63 : vector<128xf32> to vector<1x128xf32>
    %65 = vector.broadcast %64 : vector<1x128xf32> to vector<128x128xf32>
    %66 = arith.addf %61, %65 : vector<128x128xf32>
    %cst_25 = arith.constant 2.000000e-01 : f32
    %67 = vector.broadcast %cst_25 : f32 to vector<128x128xf32>
    %68 = arith.mulf %67, %66 : vector<128x128xf32>
    %69 = arith.maximumf %66, %68 : vector<128x128xf32>
    %70 = arith.truncf %69 : vector<128x128xf32> to vector<128x128xbf16>
    %c5 = arith.constant 5 : index
    %c0_26 = arith.constant 0 : index
    %c0_27 = arith.constant 0 : index
    %71 = vector.load %arg3[%c5, %c0_26, %c0_27] : memref<6x128x128xbf16, #tpu.memory_space<vmem>>, vector<1x128x128xbf16>
    %72 = vector.shape_cast %71 : vector<1x128x128xbf16> to vector<128x128xbf16>
    %cst_28 = arith.constant dense<0.000000e+00> : vector<128x128xf32>
    %73 = tpu.matmul %70, %72, %cst_28 {dimension_numbers = #tpu.dot_dimension_numbers<[1], [0], [0], [1], [0, 0, 1, 1], [], []>} : vector<128x128xbf16>, vector<128x128xbf16>, vector<128x128xf32> -> vector<128x128xf32>
    %74 = vector.extract_strided_slice %0 {offsets = [6, 0], sizes = [1, 128], strides = [1, 1]} : vector<7x128xf32> to vector<1x128xf32>
    %75 = vector.shape_cast %74 : vector<1x128xf32> to vector<128xf32>
    %76 = vector.shape_cast %75 : vector<128xf32> to vector<1x128xf32>
    %77 = vector.broadcast %76 : vector<1x128xf32> to vector<128x128xf32>
    %78 = arith.addf %73, %77 : vector<128x128xf32>
    %cst_29 = arith.constant 2.000000e-01 : f32
    %79 = vector.broadcast %cst_29 : f32 to vector<128x128xf32>
    %80 = arith.mulf %79, %78 : vector<128x128xf32>
    %81 = arith.maximumf %78, %80 : vector<128x128xf32>
    %82 = arith.truncf %81 : vector<128x128xf32> to vector<128x128xbf16>
    %c0_30 = arith.constant 0 : index
    %c0_31 = arith.constant 0 : index
    %83 = vector.load %arg4[%c0_30, %c0_31] : memref<128x32xbf16, #tpu.memory_space<vmem>>, vector<128x32xbf16>
    %cst_32 = arith.constant dense<0.000000e+00> : vector<128x32xf32>
    %84 = tpu.matmul %82, %83, %cst_32 {dimension_numbers = #tpu.dot_dimension_numbers<[1], [0], [0], [1], [0, 0, 1, 1], [], []>} : vector<128x128xbf16>, vector<128x32xbf16>, vector<128x32xf32> -> vector<128x32xf32>
    %c0_33 = arith.constant 0 : index
    %c0_34 = arith.constant 0 : index
    %85 = vector.load %arg6[%c0_33, %c0_34] : memref<1x32xf32, #tpu.memory_space<vmem>>, vector<1x32xf32>
    %86 = vector.broadcast %85 : vector<1x32xf32> to vector<128x32xf32>
    %87 = arith.addf %84, %86 : vector<128x32xf32>
    %c0_35 = arith.constant 0 : index
    %c0_36 = arith.constant 0 : index
    %88 = vector.load %arg7[%c0_35, %c0_36] : memref<128x32xf32, #tpu.memory_space<vmem>>, vector<128x32xf32>
    tpu.vector_store %arg7[%c0_35, %c0_36], %87 {strides = array<i32>} : memref<128x32xf32, #tpu.memory_space<vmem>>, vector<128x32xf32>,
    return
  }
  func.func @transform_0(%arg0: i32) -> (i32, i32) {
    %c0_i32 = arith.constant 0 : i32
    %c0_i32_0 = arith.constant 0 : i32
    return %arg0, %c0_i32 : i32, i32
  }
  func.func @transform_1(%arg0: i32) -> (i32, i32) {
    %c0_i32 = arith.constant 0 : i32
    %c0_i32_0 = arith.constant 0 : i32
    %c0_i32_1 = arith.constant 0 : i32
    return %c0_i32, %c0_i32_0 : i32, i32
  }
  func.func @transform_2(%arg0: i32) -> (i32, i32, i32) {
    %c0_i32 = arith.constant 0 : i32
    %c0_i32_0 = arith.constant 0 : i32
    %c0_i32_1 = arith.constant 0 : i32
    %c0_i32_2 = arith.constant 0 : i32
    return %c0_i32, %c0_i32_0, %c0_i32_1 : i32, i32, i32
  }
  func.func @transform_3(%arg0: i32) -> (i32, i32) {
    %c0_i32 = arith.constant 0 : i32
    %c0_i32_0 = arith.constant 0 : i32
    %c0_i32_1 = arith.constant 0 : i32
    return %c0_i32, %c0_i32_0 : i32, i32
  }
  func.func @transform_4(%arg0: i32) -> (i32, i32) {
    %c0_i32 = arith.constant 0 : i32
    %c0_i32_0 = arith.constant 0 : i32
    %c0_i32_1 = arith.constant 0 : i32
    return %c0_i32, %c0_i32_0 : i32, i32
  }
  func.func @transform_5(%arg0: i32) -> (i32, i32) {
    %c0_i32 = arith.constant 0 : i32
    %c0_i32_0 = arith.constant 0 : i32
    %c0_i32_1 = arith.constant 0 : i32
    return %c0_i32, %c0_i32_0 : i32, i32
  }
  func.func @transform_6(%arg0: i32) -> (i32, i32) {
    %c0_i32 = arith.constant 0 : i32
    %c0_i32_0 = arith.constant 0 : i32
    return %arg0, %c0_i32 : i32, i32
  }
}

</mosaic_0001>

<bundles_post_ra>
// kernel: tpu_custom_call.1
= control target key start
LH: loop header
LB: loop body
LE: loop exit
PB: predicated region body
PF: predicated region fallthrough
CT: control target
= control target key end

     0   :  { %s2556_s21 = smov 0   ;;  %s2966_s0 = inlined_call_operand.vmem [shape: f32[256,32], index: 0, kind: input, shape index: {}]   ;;  %s2967_s1 = inlined_call_operand.vmem [shape: bf16[32,128], index: 1, kind: input, shape index: {}]   ;;  %s2968_s2 = inlined_call_operand.vmem [shape: bf16[6,128,128], index: 2, kind: input, shape index: {}]   ;;  %s2969_s3 = inlined_call_operand.vmem [shape: bf16[128,32], index: 3, kind: input, shape index: {}]   ;;  %s2970_s4 = inlined_call_operand.vmem [shape: f32[7,128], index: 4, kind: input, shape index: {}]   ;;  %s2971_s5 = inlined_call_operand.vmem [shape: f32[1,32], index: 5, kind: input, shape index: {}]   ;;  %s2972_s6 = inlined_call_operand.vmem [shape: f32[256,32], index: 6, kind: output, shape index: {}]  }
   0x1 LB: > { %s1906_s22 = sadd.s32 4294967295, %s2519_s21   ;;  %p1910_p0 = scmp.ge.s32.totalorder %s2519_s21, 1  ;;  %s2519_s21 = sphi %s2556_s21, %s16_s21  }
   0x2   : > { %p213_p1 = scmp.lt.s32.totalorder %s2519_s21, 3 }
   0x4   : > { %p214_p2 = pnand %p1910_p0, %p213_p1 }
   0x5   : > { %v2454_v0 = vld [vmem:[%s2967_s1] sm:$0xff] (!%p214_p2)   ;;  %s1911_s25 = sshll.u32 (!%p214_p2), %s1906_s22, 4  ;;  %v2455_v1 = vld [vmem:[%s2967_s1 + $0x8] sm:$0xff] (!%p214_p2)   ;;  %v2458_v4 = vld [vmem:[%s2968_s2 + $0x10] sm:$0xff] (!%p214_p2)   ;;  %vm301_vm0 = vcmask (!%p214_p2), 261120   ;;  %v285_v39 = vlaneseq (!%p214_p2) }
   0x6   : > { %217 = sbr.rel (%p214_p2) target bundleno = 1826 (0x722), region = 44  ;;  %p244_p3 = scmp.lt.s32.totalorder (!%p214_p2), %s1911_s25, 31  ;;  %2186 = vmatprep.subr.bf16.mxu0 (!%p214_p2), %v2454_v0  ;;  %v2456_v2 = vld [vmem:[%s2968_s2] sm:$0xff] (!%p214_p2)   ;;  %v2457_v3 = vld [vmem:[%s2968_s2 + $0x8] sm:$0xff] (!%p214_p2)   ;;  %v2459_v14 = vld [vmem:[%s2968_s2 + $0x18] sm:$0xff] (!%p214_p2)  }
   0x7   : > { %2187 = vmatpush3.bf16.msra.mxu0 (!%p214_p2), %v2454_v0  ;;  %2206 = vmatprep.subr.bf16.mxu1 (!%p214_p2), %v2456_v2  ;;  %v2460_v19 = vld [vmem:[%s2968_s2 + $0x20] sm:$0xff] (!%p214_p2)   ;;  %v2461_v31 = vld [vmem:[%s2968_s2 + $0x28] sm:$0xff] (!%p214_p2)   ;;  %v2462_v32 = vld [vmem:[%s2968_s2 + $0x30] sm:$0xff] (!%p214_p2)   ;;  %v2643_v40 = vshrl.u32 (!%p214_p2), %v285_v39, 7 }
   0x8   : > { %2188 = vmatprep.subr.bf16.mxu0 (!%p214_p2), %v2455_v1  ;;  %2207 = vmatpush3.bf16.msra.mxu1 (!%p214_p2), %v2456_v2  ;;  %v2463_v33 = vld [vmem:[%s2968_s2 + $0x38] sm:$0xff] (!%p214_p2)   ;;  %v2464_v34 = vld [vmem:[%s2968_s2 + $0x40] sm:$0xff] (!%p214_p2)   ;;  %v2465_v35 = vld [vmem:[%s2968_s2 + $0x48] sm:$0xff] (!%p214_p2)  }
   0x9   : > { %2208 = vmatprep.subr.bf16.mxu1 (!%p214_p2), %v2457_v3  ;;  %v2466_v36 = vld [vmem:[%s2968_s2 + $0x50] sm:$0xff] (!%p214_p2)   ;;  %v2467_v37 = vld [vmem:[%s2968_s2 + $0x58] sm:$0xff] (!%p214_p2)   ;;  %v2468_v38 = vld [vmem:[%s2968_s2 + $0x60] sm:$0xff] (!%p214_p2)   ;;  %v287_v41 = vsub.s32 (!%p214_p2), 0, %v2643_v40 }
   0xa   : > { %v2649_v42 = vld [vmem:[%s2970_s4] sm:$0x7f] (!%p214_p2) }
   0xb   : > { %2189 = vmatpush3.bf16.msra.mxu0 (!%p214_p2), %v2455_v1  ;;  %v2652_v43 = vrot.slane (!%p214_p2), %v2649_v42, %v287_v41 }
   0xc   : > { %2209 = vmatpush3.bf16.msra.mxu1 (!%p214_p2), %v2457_v3  ;;  %2238 = vmatprep.subr.bf16.mxu0 (!%p214_p2), %v2464_v34 }
   0xd   : > { %s2974_s25 = smov (!%p244_p3, %s1911_s25), 31  ;;  %2210 = vmatprep.subr.bf16.mxu1 %v2458_v4 }
   0xe   : > { %s1912_s8 = sshll.u32 %s2974_s25, 3 }
   0xf   : > { %s2584_s11 = scalar_lea.vmem %s2966_s0, %s1912_s8  ;;  %s2929_s24 = scalar_lea.vmem %s2972_s6, %s1912_s8 }
  0x10   : > { %v257_v5 = vld [vmem:[%s2584_s11] sm:$0xff]  ;;  %v258_v6 = vld [vmem:[%s2584_s11 + $0x8] sm:$0xff]  ;;  %v259_v7 = vld [vmem:[%s2584_s11 + $0x10] sm:$0xff]  ;;  %2211 = vmatpush3.bf16.msra.mxu1 %v2458_v4 }
  0x11   : > { %v273_v8 = vpack.c.bf16 %v258_v6, %v257_v5  ;;  %v260_v9 = vld [vmem:[%s2584_s11 + $0x18] sm:$0xff]  ;;  %v261_v10 = vld [vmem:[%s2584_s11 + $0x20] sm:$0xff]  ;;  %v262_v11 = vld [vmem:[%s2584_s11 + $0x28] sm:$0xff]  ;;  %2212 = vmatprep.subr.bf16.mxu1 %v2459_v14 }
  0x12   : > { %v274_v12 = vpack.c.bf16 %v260_v9, %v259_v7  ;;  %v275_v13 = vpack.c.bf16 %v262_v11, %v261_v10  ;;  %v263_v15 = vld [vmem:[%s2584_s11 + $0x30] sm:$0xff]  ;;  %v264_v16 = vld [vmem:[%s2584_s11 + $0x38] sm:$0xff]  ;;  %v265_v17 = vld [vmem:[%s2584_s11 + $0x40] sm:$0xff] }
  0x13   : > { %2190 = vmatprep.mubr.msk.bf16.mxu0 %vm301_vm0, %v273_v8  ;;  %v266_v18 = vld [vmem:[%s2584_s11 + $0x48] sm:$0xff]  ;;  %v276_v20 = vpack.c.bf16 %v264_v16, %v263_v15  ;;  %v267_v22 = vld [vmem:[%s2584_s11 + $0x50] sm:$0xff]  ;;  %v268_v23 = vld [vmem:[%s2584_s11 + $0x58] sm:$0xff] }
  0x14   : > { %2191 = vmatmul.mubr.msk.bf16.vlgmr.msra.gmra.mrb[0].mxu0 %vm301_vm0, %v274_v12  ;;  %v277_v21 = vpack.c.bf16 %v266_v18, %v265_v17  ;;  %2213 = vmatpush3.bf16.msra.mxu1 %v2459_v14  ;;  %v269_v24 = vld [vmem:[%s2584_s11 + $0x60] sm:$0xff]  ;;  %v270_v25 = vld [vmem:[%s2584_s11 + $0x68] sm:$0xff]  ;;  %v278_v26 = vpack.c.bf16 %v268_v23, %v267_v22  ;;  %v271_v28 = vld [vmem:[%s2584_s11 + $0x70] sm:$0xff] }
  0x15   : > { %2194 = vmatprep.mubr.msk.bf16.mxu0 %vm301_vm0, %v275_v13  ;;  %2214 = vmatprep.subr.bf16.mxu1 %v2460_v19  ;;  %v279_v27 = vpack.c.bf16 %v270_v25, %v269_v24  ;;  %v272_v29 = vld [vmem:[%s2584_s11 + $0x78] sm:$0xff] }
  0x16   : > { %v280_v30 = vpack.c.bf16 %v272_v29, %v271_v28  ;;  %2239 = vmatpush3.bf16.msra.mxu0 %v2464_v34 }
  0x17   : > { %2240 = vmatprep.subr.bf16.mxu0 %v2465_v35 }
  0x18   : > { %2215 = vmatpush3.bf16.msra.mxu1 %v2460_v19 }
  0x19   : > { %2216 = vmatprep.subr.bf16.mxu1 %v2461_v31 }
  0x1a   : > { %2241 = vmatpush3.bf16.msra.mxu0 %v2465_v35 }
  0x1b   : > { %2242 = vmatprep.subr.bf16.mxu0 %v2466_v36 }
  0x1c   : > { %2195 = vmatmul.mubr.msk.bf16.gmra.mrb[4].mxu0 %vm301_vm0, %v276_v20  ;;  %2217 = vmatpush3.bf16.msra.mxu1 %v2461_v31 }
  0x1d   : > { %2198 = vmatprep.mubr.msk.bf16.mxu0 %vm301_vm0, %v277_v21  ;;  %2218 = vmatprep.subr.bf16.mxu1 %v2462_v32 }
  0x1e   : > { %2243 = vmatpush3.bf16.msra.mxu0 %v2466_v36 }
  0x1f   : > { %2244 = vmatprep.subr.bf16.mxu0 %v2467_v37 }
  0x20   : > { %2219 = vmatpush3.bf16.msra.mxu1 %v2462_v32 }
  0x21   : > { %2220 = vmatprep.subr.bf16.mxu1 %v2463_v33 }
  0x22   : > { %2245 = vmatpush3.bf16.msra.mxu0 %v2467_v37 }
  0x23   : > { %2246 = vmatprep.subr.bf16.mxu0 %v2468_v38 }
  0x24   : > { %2199 = vmatmul.mubr.msk.bf16.gmra.mrb[8].mxu0 %vm301_vm0, %v278_v26  ;;  %2221 = vmatpush3.bf16.msra.mxu1 %v2463_v33 }
  0x25   : > { %2202 = vmatprep.mubr.msk.bf16.mxu0 %vm301_vm0, %v279_v27 }
  0x26   : > { %2247 = vmatpush3.bf16.msra.mxu0 %v2468_v38 }
  0x2c   : > { %2203 = vmatmul.mubr.msk.bf16.gmra.mrb[12].mxu0 %vm301_vm0, %v280_v30 }
  0xe7   : > { %v2192_v44 = vpop.f32.mrb[0].mxu0 }
  0xe8   : > { %v369_v45 = vadd.f32 %v2192_v44, %v2652_v43  ;;  %v360_v46 = vpop.f32.mrb[1].mxu0 }
  0xe9   : > { %v361_v47 = vadd.f32 %v360_v46, %v2652_v43  ;;  %v2193_v48 = vpop.f32.mrb[2].mxu0 }
  0xea   : > { %v425_v49 = vmul.f32 0.2, %v369_v45  ;;  %v372_v50 = vadd.f32 %v2193_v48, %v2652_v43  ;;  %v363_v51 = vpop.f32.mrb[3].mxu0 }
  0xeb   : > { %v423_v52 = vmul.f32 0.2, %v361_v47  ;;  %v364_v53 = vadd.f32 %v363_v51, %v2652_v43 }
  0xec   : > { %v426_v54 = vmul.f32 0.2, %v372_v50  ;;  %v441_v56 = vmax.f32 %v369_v45, %v425_v49 }
  0xed   : > { %v424_v55 = vmul.f32 0.2, %v364_v53  ;;  %v439_v59 = vmax.f32 %v361_v47, %v423_v52 }
  0xee   : > { %v442_v57 = vmax.f32 %v372_v50, %v426_v54 }
  0xef   : > { %v2196_v58 = vpop.f32.mrb[4].mxu0  ;;  %v440_v60 = vmax.f32 %v364_v53, %v424_v55  ;;  %v2469_v55 = vld [vmem:[%s2968_s2 + $0x68] sm:$0xff]  }
  0xf0   : > { %v385_v61 = vadd.f32 %v2196_v58, %v2652_v43  ;;  %v376_v62 = vpop.f32.mrb[5].mxu0  ;;  %v456_v63 = vpack.c.bf16 %v442_v57, %v441_v56  ;;  %2248 = vmatprep.subr.bf16.mxu0 %v2469_v55  ;;  %v2471_v56 = vld [vmem:[%s2968_s2 + $0x78] sm:$0xff]   ;;  %v2472_v57 = vld [vmem:[%s2968_s2 + $0x80] sm:$0xff]   ;;  %v2473_v58 = vld [vmem:[%s2968_s2 + $0x88] sm:$0xff]  }
  0xf1   : > { %v377_v0 = vadd.f32 %v376_v62, %v2652_v43  ;;  %v2197_v1 = vpop.f32.mrb[6].mxu0  ;;  %v455_v2 = vpack.c.bf16 %v440_v60, %v439_v59  ;;  %2249 = vmatpush3.bf16.msra.mxu0 %v2469_v55  ;;  %2270 = vmatprep.subr.bf16.mxu1 %v2472_v57  ;;  %v2474_v59 = vld [vmem:[%s2968_s2 + $0x90] sm:$0xff]   ;;  %v2475_v60 = vld [vmem:[%s2968_s2 + $0x98] sm:$0xff]   ;;  %v481_v62 = vsub.s32 1, %v2643_v40 }
  0xf2   : > { %v429_v3 = vmul.f32 0.2, %v385_v61  ;;  %v388_v4 = vadd.f32 %v2197_v1, %v2652_v43  ;;  %v379_v5 = vpop.f32.mrb[7].mxu0 }
  0xf3   : > { %v427_v6 = vmul.f32 0.2, %v377_v0  ;;  %v380_v7 = vadd.f32 %v379_v5, %v2652_v43  ;;  %2222 = vmatprep.mubr.bf16.mxu1 %v455_v2 }
  0xf4   : > { %v430_v8 = vmul.f32 0.2, %v388_v4  ;;  %2223 = vmatmul.mubr.bf16.vlgmr.msra.gmra.mrb[0].mxu1 %v456_v63  ;;  %v445_v10 = vmax.f32 %v385_v61, %v429_v3  ;;  %v2476_v61 = vld [vmem:[%s2968_s2 + $0xa0] sm:$0xff]   ;;  %v2696_v63 = vrot.slane %v2649_v42, %v481_v62 }
  0xf5   : > { %v428_v9 = vmul.f32 0.2, %v380_v7  ;;  %v443_v12 = vmax.f32 %v377_v0, %v427_v6  ;;  %2271 = vmatpush3.bf16.msra.mxu1 %v2472_v57 }
  0xf6   : > { %v446_v11 = vmax.f32 %v388_v4, %v430_v8  ;;  %2272 = vmatprep.subr.bf16.mxu1 %v2473_v58 }
  0xf7   : > { %v444_v13 = vmax.f32 %v380_v7, %v428_v9  ;;  %v2200_v14 = vpop.f32.mrb[8].mxu0 }
  0xf8   : > { %v401_v15 = vadd.f32 %v2200_v14, %v2652_v43  ;;  %v392_v16 = vpop.f32.mrb[9].mxu0  ;;  %v458_v17 = vpack.c.bf16 %v446_v11, %v445_v10 }
  0xf9   : > { %v393_v18 = vadd.f32 %v392_v16, %v2652_v43  ;;  %v2201_v19 = vpop.f32.mrb[10].mxu0  ;;  %v457_v20 = vpack.c.bf16 %v444_v13, %v443_v12  ;;  %2273 = vmatpush3.bf16.msra.mxu1 %v2473_v58 }
  0xfa   : > { %v433_v21 = vmul.f32 0.2, %v401_v15  ;;  %v404_v22 = vadd.f32 %v2201_v19, %v2652_v43  ;;  %v395_v23 = vpop.f32.mrb[11].mxu0  ;;  %2274 = vmatprep.subr.bf16.mxu1 %v2474_v59 }
  0xfb   : > { %v431_v24 = vmul.f32 0.2, %v393_v18  ;;  %v396_v25 = vadd.f32 %v395_v23, %v2652_v43  ;;  %2226 = vmatprep.mubr.bf16.mxu1 %v457_v20 }
  0xfc   : > { %v434_v26 = vmul.f32 0.2, %v404_v22  ;;  %2227 = vmatmul.mubr.bf16.gmra.mrb[4].mxu1 %v458_v17  ;;  %v449_v28 = vmax.f32 %v401_v15, %v433_v21 }
  0xfd   : > { %v432_v27 = vmul.f32 0.2, %v396_v25  ;;  %v447_v30 = vmax.f32 %v393_v18, %v431_v24  ;;  %2275 = vmatpush3.bf16.msra.mxu1 %v2474_v59 }
  0xfe   : > { %v450_v29 = vmax.f32 %v404_v22, %v434_v26  ;;  %2276 = vmatprep.subr.bf16.mxu1 %v2475_v60 }
  0xff   : > { %v448_v31 = vmax.f32 %v396_v25, %v432_v27  ;;  %v2204_v32 = vpop.f32.mrb[12].mxu0 }
 0x100   : > { %v417_v33 = vadd.f32 %v2204_v32, %v2652_v43  ;;  %v408_v34 = vpop.f32.mrb[13].mxu0  ;;  %v460_v35 = vpack.c.bf16 %v450_v29, %v449_v28 }
 0x101   : > { %v409_v36 = vadd.f32 %v408_v34, %v2652_v43  ;;  %v2205_v37 = vpop.f32.mrb[14].mxu0  ;;  %v459_v38 = vpack.c.bf16 %v448_v31, %v447_v30  ;;  %2277 = vmatpush3.bf16.msra.mxu1 %v2475_v60 }
 0x102   : > { %v437_v39 = vmul.f32 0.2, %v417_v33  ;;  %v420_v41 = vadd.f32 %v2205_v37, %v2652_v43  ;;  %v411_v44 = vpop.f32.mrb[15].mxu0  ;;  %2278 = vmatprep.subr.bf16.mxu1 %v2476_v61 }
 0x103   : > { %v435_v45 = vmul.f32 0.2, %v409_v36  ;;  %v412_v46 = vadd.f32 %v411_v44, %v2652_v43  ;;  %2230 = vmatprep.mubr.bf16.mxu1 %v459_v38  ;;  %v2470_v43 = vld [vmem:[%s2968_s2 + $0x70] sm:$0xff]  }
 0x104   : > { %v438_v47 = vmul.f32 0.2, %v420_v41  ;;  %2231 = vmatmul.mubr.bf16.gmra.mrb[8].mxu1 %v460_v35  ;;  %v453_v49 = vmax.f32 %v417_v33, %v437_v39  ;;  %2250 = vmatprep.subr.bf16.mxu0 %v2470_v43 }
 0x105   : > { %v436_v48 = vmul.f32 0.2, %v412_v46  ;;  %v451_v51 = vmax.f32 %v409_v36, %v435_v45  ;;  %2251 = vmatpush3.bf16.msra.mxu0 %v2470_v43  ;;  %2279 = vmatpush3.bf16.msra.mxu1 %v2476_v61 }
 0x106   : > { %v454_v50 = vmax.f32 %v420_v41, %v438_v47  ;;  %2252 = vmatprep.subr.bf16.mxu0 %v2471_v56 }
 0x107   : > { %v452_v52 = vmax.f32 %v412_v46, %v436_v48 }
 0x108   : > { %v462_v53 = vpack.c.bf16 %v454_v50, %v453_v49 }
 0x109   : > { %v461_v54 = vpack.c.bf16 %v452_v52, %v451_v51  ;;  %2253 = vmatpush3.bf16.msra.mxu0 %v2471_v56 }
 0x10b   : > { %2234 = vmatprep.mubr.bf16.mxu1 %v461_v54 }
 0x10c   : > { %2235 = vmatmul.mubr.bf16.gmra.mrb[12].mxu1 %v462_v53 }
 0x1c7   : > { %v2224_v0 = vpop.f32.mrb[0].mxu1 }
 0x1c8   : > { %v574_v1 = vadd.f32 %v2224_v0, %v2696_v63  ;;  %v565_v2 = vpop.f32.mrb[1].mxu1 }
 0x1c9   : > { %v566_v3 = vadd.f32 %v565_v2, %v2696_v63  ;;  %v2225_v4 = vpop.f32.mrb[2].mxu1 }
 0x1ca   : > { %v630_v5 = vmul.f32 0.2, %v574_v1  ;;  %v577_v6 = vadd.f32 %v2225_v4, %v2696_v63  ;;  %v568_v7 = vpop.f32.mrb[3].mxu1 }
 0x1cb   : > { %v628_v8 = vmul.f32 0.2, %v566_v3  ;;  %v569_v9 = vadd.f32 %v568_v7, %v2696_v63 }
 0x1cc   : > { %v631_v10 = vmul.f32 0.2, %v577_v6  ;;  %v646_v12 = vmax.f32 %v574_v1, %v630_v5 }
 0x1cd   : > { %v629_v11 = vmul.f32 0.2, %v569_v9  ;;  %v644_v14 = vmax.f32 %v566_v3, %v628_v8 }
 0x1ce   : > { %v647_v13 = vmax.f32 %v577_v6, %v631_v10 }
 0x1cf   : > { %v645_v15 = vmax.f32 %v569_v9, %v629_v11  ;;  %v2228_v16 = vpop.f32.mrb[4].mxu1  ;;  %v2477_v11 = vld [vmem:[%s2968_s2 + $0xa8] sm:$0xff]  }
 0x1d0   : > { %v661_v17 = vpack.c.bf16 %v647_v13, %v646_v12  ;;  %v590_v18 = vadd.f32 %v2228_v16, %v2696_v63  ;;  %v581_v19 = vpop.f32.mrb[5].mxu1  ;;  %2280 = vmatprep.subr.bf16.mxu1 %v2477_v11  ;;  %v2479_v12 = vld [vmem:[%s2968_s2 + $0xb8] sm:$0xff]   ;;  %v2480_v13 = vld [vmem:[%s2968_s2 + $0xc0] sm:$0xff]  }
 0x1d1   : > { %v582_v20 = vadd.f32 %v581_v19, %v2696_v63  ;;  %v2229_v21 = vpop.f32.mrb[6].mxu1  ;;  %v660_v22 = vpack.c.bf16 %v645_v15, %v644_v14  ;;  %2281 = vmatpush3.bf16.msra.mxu1 %v2477_v11  ;;  %v2481_v14 = vld [vmem:[%s2968_s2 + $0xc8] sm:$0xff]   ;;  %2302 = vmatprep.subr.bf16.mxu0 %v2480_v13  ;;  %v2482_v15 = vld [vmem:[%s2968_s2 + $0xd0] sm:$0xff]   ;;  %v2483_v16 = vld [vmem:[%s2968_s2 + $0xd8] sm:$0xff]   ;;  %v687_v19 = vsub.s32 2, %v2643_v40 }
 0x1d2   : > { %v634_v23 = vmul.f32 0.2, %v590_v18  ;;  %v593_v24 = vadd.f32 %v2229_v21, %v2696_v63  ;;  %v584_v25 = vpop.f32.mrb[7].mxu1 }
 0x1d3   : > { %v632_v26 = vmul.f32 0.2, %v582_v20  ;;  %v585_v27 = vadd.f32 %v584_v25, %v2696_v63  ;;  %2254 = vmatprep.mubr.bf16.mxu0 %v660_v22 }
 0x1d4   : > { %v635_v28 = vmul.f32 0.2, %v593_v24  ;;  %2255 = vmatmul.mubr.bf16.vlgmr.msra.gmra.mrb[16].mxu0 %v661_v17  ;;  %v650_v30 = vmax.f32 %v590_v18, %v634_v23  ;;  %v2484_v17 = vld [vmem:[%s2968_s2 + $0xe0] sm:$0xff]   ;;  %v2485_v18 = vld [vmem:[%s2968_s2 + $0xe8] sm:$0xff]  }
 0x1d5   : > { %v633_v29 = vmul.f32 0.2, %v585_v27  ;;  %v648_v32 = vmax.f32 %v582_v20, %v632_v26  ;;  %2303 = vmatpush3.bf16.msra.mxu0 %v2480_v13  ;;  %v2743_v20 = vrot.slane %v2649_v42, %v687_v19 }
 0x1d6   : > { %v651_v31 = vmax.f32 %v593_v24, %v635_v28  ;;  %2304 = vmatprep.subr.bf16.mxu0 %v2481_v14 }
 0x1d7   : > { %v649_v33 = vmax.f32 %v585_v27, %v633_v29  ;;  %v2232_v34 = vpop.f32.mrb[8].mxu1 }
 0x1d8   : > { %v606_v35 = vadd.f32 %v2232_v34, %v2696_v63  ;;  %v597_v36 = vpop.f32.mrb[9].mxu1  ;;  %v663_v37 = vpack.c.bf16 %v651_v31, %v650_v30 }
 0x1d9   : > { %v598_v38 = vadd.f32 %v597_v36, %v2696_v63  ;;  %v2233_v39 = vpop.f32.mrb[10].mxu1  ;;  %v662_v41 = vpack.c.bf16 %v649_v33, %v648_v32  ;;  %2305 = vmatpush3.bf16.msra.mxu0 %v2481_v14 }
 0x1da   : > { %v638_v44 = vmul.f32 0.2, %v606_v35  ;;  %v609_v45 = vadd.f32 %v2233_v39, %v2696_v63  ;;  %v600_v46 = vpop.f32.mrb[11].mxu1  ;;  %2306 = vmatprep.subr.bf16.mxu0 %v2482_v15 }
 0x1db   : > { %v636_v47 = vmul.f32 0.2, %v598_v38  ;;  %v601_v48 = vadd.f32 %v600_v46, %v2696_v63  ;;  %2258 = vmatprep.mubr.bf16.mxu0 %v662_v41 }
 0x1dc   : > { %v639_v49 = vmul.f32 0.2, %v609_v45  ;;  %2259 = vmatmul.mubr.bf16.gmra.mrb[20].mxu0 %v663_v37  ;;  %v654_v51 = vmax.f32 %v606_v35, %v638_v44 }
 0x1dd   : > { %v637_v50 = vmul.f32 0.2, %v601_v48  ;;  %v652_v53 = vmax.f32 %v598_v38, %v636_v47  ;;  %2307 = vmatpush3.bf16.msra.mxu0 %v2482_v15 }
 0x1de   : > { %v655_v52 = vmax.f32 %v609_v45, %v639_v49  ;;  %2308 = vmatprep.subr.bf16.mxu0 %v2483_v16 }
 0x1df   : > { %v653_v54 = vmax.f32 %v601_v48, %v637_v50  ;;  %v2236_v55 = vpop.f32.mrb[12].mxu1 }
 0x1e0   : > { %v622_v43 = vadd.f32 %v2236_v55, %v2696_v63  ;;  %v613_v56 = vpop.f32.mrb[13].mxu1  ;;  %v665_v57 = vpack.c.bf16 %v655_v52, %v654_v51 }
 0x1e1   : > { %v614_v58 = vadd.f32 %v613_v56, %v2696_v63  ;;  %v2237_v59 = vpop.f32.mrb[14].mxu1  ;;  %v664_v60 = vpack.c.bf16 %v653_v54, %v652_v53  ;;  %2309 = vmatpush3.bf16.msra.mxu0 %v2483_v16 }
 0x1e2   : > { %v642_v61 = vmul.f32 0.2, %v622_v43  ;;  %v625_v62 = vadd.f32 %v2237_v59, %v2696_v63  ;;  %v616_v0 = vpop.f32.mrb[15].mxu1  ;;  %2310 = vmatprep.subr.bf16.mxu0 %v2484_v17 }
 0x1e3   : > { %v640_v1 = vmul.f32 0.2, %v614_v58  ;;  %v617_v2 = vadd.f32 %v616_v0, %v2696_v63  ;;  %2262 = vmatprep.mubr.bf16.mxu0 %v664_v60  ;;  %v2478_v63 = vld [vmem:[%s2968_s2 + $0xb0] sm:$0xff]  }
 0x1e4   : > { %v643_v3 = vmul.f32 0.2, %v625_v62  ;;  %2263 = vmatmul.mubr.bf16.gmra.mrb[24].mxu0 %v665_v57  ;;  %v658_v5 = vmax.f32 %v622_v43, %v642_v61  ;;  %2282 = vmatprep.subr.bf16.mxu1 %v2478_v63 }
 0x1e5   : > { %v641_v4 = vmul.f32 0.2, %v617_v2  ;;  %v656_v7 = vmax.f32 %v614_v58, %v640_v1  ;;  %2283 = vmatpush3.bf16.msra.mxu1 %v2478_v63  ;;  %2311 = vmatpush3.bf16.msra.mxu0 %v2484_v17 }
 0x1e6   : > { %v659_v6 = vmax.f32 %v625_v62, %v643_v3  ;;  %2284 = vmatprep.subr.bf16.mxu1 %v2479_v12  ;;  %2312 = vmatprep.subr.bf16.mxu0 %v2485_v18 }
 0x1e7   : > { %v657_v8 = vmax.f32 %v617_v2, %v641_v4 }
 0x1e8   : > { %v667_v9 = vpack.c.bf16 %v659_v6, %v658_v5 }
 0x1e9   : > { %v666_v10 = vpack.c.bf16 %v657_v8, %v656_v7  ;;  %2285 = vmatpush3.bf16.msra.mxu1 %v2479_v12  ;;  %2313 = vmatpush3.bf16.msra.mxu0 %v2485_v18 }
 0x1eb   : > { %2266 = vmatprep.mubr.bf16.mxu0 %v666_v10 }
 0x1ec   : > { %2267 = vmatmul.mubr.bf16.gmra.mrb[28].mxu0 %v667_v9 }
 0x2a7   : > { %v2256_v21 = vpop.f32.mrb[16].mxu0 }
 0x2a8   : > { %v780_v22 = vadd.f32 %v2256_v21, %v2743_v20  ;;  %v771_v23 = vpop.f32.mrb[17].mxu0 }
 0x2a9   : > { %v772_v24 = vadd.f32 %v771_v23, %v2743_v20  ;;  %v2257_v25 = vpop.f32.mrb[18].mxu0 }
 0x2aa   : > { %v836_v26 = vmul.f32 0.2, %v780_v22  ;;  %v783_v27 = vadd.f32 %v2257_v25, %v2743_v20  ;;  %v774_v28 = vpop.f32.mrb[19].mxu0 }
 0x2ab   : > { %v834_v29 = vmul.f32 0.2, %v772_v24  ;;  %v775_v30 = vadd.f32 %v774_v28, %v2743_v20 }
 0x2ac   : > { %v837_v31 = vmul.f32 0.2, %v783_v27  ;;  %v852_v33 = vmax.f32 %v780_v22, %v836_v26 }
 0x2ad   : > { %v835_v32 = vmul.f32 0.2, %v775_v30  ;;  %v850_v35 = vmax.f32 %v772_v24, %v834_v29 }
 0x2ae   : > { %v853_v34 = vmax.f32 %v783_v27, %v837_v31 }
 0x2af   : > { %v851_v36 = vmax.f32 %v775_v30, %v835_v32  ;;  %v2260_v37 = vpop.f32.mrb[20].mxu0  ;;  %v2486_v32 = vld [vmem:[%s2968_s2 + $0xf0] sm:$0xff]  }
 0x2b0   : > { %v867_v38 = vpack.c.bf16 %v853_v34, %v852_v33  ;;  %v796_v39 = vadd.f32 %v2260_v37, %v2743_v20  ;;  %v787_v41 = vpop.f32.mrb[21].mxu0  ;;  %2314 = vmatprep.subr.bf16.mxu0 %v2486_v32  ;;  %v2488_v33 = vld [vmem:[%s2968_s2 + $0x100] sm:$0xff]   ;;  %v2489_v34 = vld [vmem:[%s2968_s2 + $0x108] sm:$0xff]  }
 0x2b1   : > { %v788_v44 = vadd.f32 %v787_v41, %v2743_v20  ;;  %v2261_v45 = vpop.f32.mrb[22].mxu0  ;;  %v866_v46 = vpack.c.bf16 %v851_v36, %v850_v35  ;;  %2315 = vmatpush3.bf16.msra.mxu0 %v2486_v32  ;;  %2334 = vmatprep.subr.bf16.mxu1 %v2488_v33  ;;  %v2490_v35 = vld [vmem:[%s2968_s2 + $0x110] sm:$0xff]   ;;  %v2491_v36 = vld [vmem:[%s2968_s2 + $0x118] sm:$0xff]   ;;  %v2492_v37 = vld [vmem:[%s2968_s2 + $0x120] sm:$0xff]  }
 0x2b2   : > { %v840_v47 = vmul.f32 0.2, %v796_v39  ;;  %v799_v48 = vadd.f32 %v2261_v45, %v2743_v20  ;;  %v790_v49 = vpop.f32.mrb[23].mxu0 }
 0x2b3   : > { %v838_v50 = vmul.f32 0.2, %v788_v44  ;;  %v791_v51 = vadd.f32 %v790_v49, %v2743_v20  ;;  %2286 = vmatprep.mubr.bf16.mxu1 %v866_v46 }
 0x2b4   : > { %v841_v52 = vmul.f32 0.2, %v799_v48  ;;  %2287 = vmatmul.mubr.bf16.vlgmr.msra.gmra.mrb[16].mxu1 %v867_v38  ;;  %v856_v54 = vmax.f32 %v796_v39, %v840_v47  ;;  %v893_v38 = vsub.s32 3, %v2643_v40 }
 0x2b5   : > { %v839_v53 = vmul.f32 0.2, %v791_v51  ;;  %v854_v43 = vmax.f32 %v788_v44, %v838_v50  ;;  %2335 = vmatpush3.bf16.msra.mxu1 %v2488_v33 }
 0x2b6   : > { %v857_v55 = vmax.f32 %v799_v48, %v841_v52  ;;  %2336 = vmatprep.subr.bf16.mxu1 %v2489_v34  ;;  %v894_v39 = vrot.slane %v2649_v42, %v893_v38 }
 0x2b7   : > { %v855_v56 = vmax.f32 %v791_v51, %v839_v53  ;;  %v2264_v57 = vpop.f32.mrb[24].mxu0 }
 0x2b8   : > { %v812_v58 = vadd.f32 %v2264_v57, %v2743_v20  ;;  %v803_v59 = vpop.f32.mrb[25].mxu0  ;;  %v869_v60 = vpack.c.bf16 %v857_v55, %v856_v54 }
 0x2b9   : > { %v804_v61 = vadd.f32 %v803_v59, %v2743_v20  ;;  %v2265_v62 = vpop.f32.mrb[26].mxu0  ;;  %v868_v0 = vpack.c.bf16 %v855_v56, %v854_v43  ;;  %2337 = vmatpush3.bf16.msra.mxu1 %v2489_v34 }
 0x2ba   : > { %v844_v1 = vmul.f32 0.2, %v812_v58  ;;  %v815_v2 = vadd.f32 %v2265_v62, %v2743_v20  ;;  %v806_v3 = vpop.f32.mrb[27].mxu0  ;;  %2338 = vmatprep.subr.bf16.mxu1 %v2490_v35 }
 0x2bb   : > { %v842_v4 = vmul.f32 0.2, %v804_v61  ;;  %v807_v5 = vadd.f32 %v806_v3, %v2743_v20  ;;  %2290 = vmatprep.mubr.bf16.mxu1 %v868_v0 }
 0x2bc   : > { %v845_v6 = vmul.f32 0.2, %v815_v2  ;;  %2291 = vmatmul.mubr.bf16.gmra.mrb[20].mxu1 %v869_v60  ;;  %v860_v8 = vmax.f32 %v812_v58, %v844_v1 }
 0x2bd   : > { %v843_v7 = vmul.f32 0.2, %v807_v5  ;;  %v858_v10 = vmax.f32 %v804_v61, %v842_v4  ;;  %2339 = vmatpush3.bf16.msra.mxu1 %v2490_v35 }
 0x2be   : > { %v861_v9 = vmax.f32 %v815_v2, %v845_v6  ;;  %2340 = vmatprep.subr.bf16.mxu1 %v2491_v36 }
 0x2bf   : > { %v859_v11 = vmax.f32 %v807_v5, %v843_v7  ;;  %v2268_v63 = vpop.f32.mrb[28].mxu0 }
 0x2c0   : > { %v828_v12 = vadd.f32 %v2268_v63, %v2743_v20  ;;  %v819_v13 = vpop.f32.mrb[29].mxu0  ;;  %v871_v14 = vpack.c.bf16 %v861_v9, %v860_v8 }
 0x2c1   : > { %v820_v15 = vadd.f32 %v819_v13, %v2743_v20  ;;  %v2269_v16 = vpop.f32.mrb[30].mxu0  ;;  %v870_v17 = vpack.c.bf16 %v859_v11, %v858_v10  ;;  %2341 = vmatpush3.bf16.msra.mxu1 %v2491_v36 }
 0x2c2   : > { %v848_v18 = vmul.f32 0.2, %v828_v12  ;;  %v831_v19 = vadd.f32 %v2269_v16, %v2743_v20  ;;  %v822_v21 = vpop.f32.mrb[31].mxu0  ;;  %2342 = vmatprep.subr.bf16.mxu1 %v2492_v37 }
 0x2c3   : > { %v846_v22 = vmul.f32 0.2, %v820_v15  ;;  %v823_v23 = vadd.f32 %v822_v21, %v2743_v20  ;;  %2294 = vmatprep.mubr.bf16.mxu1 %v870_v17  ;;  %v2487_v20 = vld [vmem:[%s2968_s2 + $0xf8] sm:$0xff]  }
 0x2c4   : > { %v849_v24 = vmul.f32 0.2, %v831_v19  ;;  %2295 = vmatmul.mubr.bf16.gmra.mrb[24].mxu1 %v871_v14  ;;  %v864_v26 = vmax.f32 %v828_v12, %v848_v18  ;;  %2316 = vmatprep.subr.bf16.mxu0 %v2487_v20  ;;  %v2493_v18 = vld [vmem:[%s2968_s2 + $0x128] sm:$0xff]   ;;  %v2495_v21 = vld [vmem:[%s2968_s2 + $0x138] sm:$0xff]  }
 0x2c5   : > { %v847_v25 = vmul.f32 0.2, %v823_v23  ;;  %v862_v28 = vmax.f32 %v820_v15, %v846_v22  ;;  %2317 = vmatpush3.bf16.msra.mxu0 %v2487_v20  ;;  %2343 = vmatpush3.bf16.msra.mxu1 %v2492_v37  ;;  %v2496_v22 = vld [vmem:[%s2968_s2 + $0x140] sm:$0xff]  }
 0x2c6   : > { %v865_v27 = vmax.f32 %v831_v19, %v849_v24  ;;  %2344 = vmatprep.subr.bf16.mxu1 %v2493_v18  ;;  %v2494_v19 = vld [vmem:[%s2968_s2 + $0x130] sm:$0xff]   ;;  %2366 = vmatprep.subr.bf16.mxu0 %v2496_v22 }
 0x2c7   : > { %v863_v29 = vmax.f32 %v823_v23, %v847_v25  ;;  %v2497_v23 = vld [vmem:[%s2968_s2 + $0x148] sm:$0xff]   ;;  %v2498_v24 = vld [vmem:[%s2968_s2 + $0x150] sm:$0xff]   ;;  %v2499_v25 = vld [vmem:[%s2968_s2 + $0x158] sm:$0xff]  }
 0x2c8   : > { %v873_v30 = vpack.c.bf16 %v865_v27, %v864_v26  ;;  %v2500_v26 = vld [vmem:[%s2968_s2 + $0x160] sm:$0xff]   ;;  %v1067_v27 = vsub.s32 4, %v2643_v40 }
 0x2c9   : > { %v872_v31 = vpack.c.bf16 %v863_v29, %v862_v28  ;;  %2345 = vmatpush3.bf16.msra.mxu1 %v2493_v18 }
 0x2ca   : > { %2346 = vmatprep.subr.bf16.mxu1 %v2494_v19  ;;  %v2810_v28 = vrot.slane %v2649_v42, %v1067_v27 }
 0x2cb   : > { %2298 = vmatprep.mubr.bf16.mxu1 %v872_v31 }
 0x2cc   : > { %2299 = vmatmul.mubr.bf16.gmra.mrb[28].mxu1 %v873_v30 }
 0x2cd   : > { %2347 = vmatpush3.bf16.msra.mxu1 %v2494_v19 }
 0x2ce   : > { %2348 = vmatprep.subr.bf16.mxu1 %v2495_v21 }
 0x2d1   : > { %2349 = vmatpush3.bf16.msra.mxu1 %v2495_v21 }
 0x387   : > { %v2288_v41 = vpop.f32.mrb[16].mxu1 }
 0x388   : > { %v977_v44 = vpop.f32.mrb[17].mxu1  ;;  %v986_v46 = vadd.f32 %v2288_v41, %v894_v39 }
 0x389   : > { %v2289_v45 = vpop.f32.mrb[18].mxu1  ;;  %v978_v49 = vadd.f32 %v977_v44, %v894_v39 }
 0x38a   : > { %v989_v47 = vadd.f32 %v2289_v45, %v894_v39  ;;  %v980_v48 = vpop.f32.mrb[19].mxu1 }
 0x38b   : > { %v981_v50 = vadd.f32 %v980_v48, %v894_v39 }
 0x38c   : > { %v1041_v51 = vpack.c.bf16 %v989_v47, %v986_v46 }
 0x38d   : > { %v1040_v52 = vpack.c.bf16 %v981_v50, %v978_v49 }
 0x38f   : > { %v2292_v53 = vpop.f32.mrb[20].mxu1  ;;  %2318 = vmatprep.mubr.bf16.mxu0 %v1040_v52 }
 0x390   : > { %v993_v54 = vpop.f32.mrb[21].mxu1  ;;  %2319 = vmatmul.mubr.bf16.vlgmr.msra.gmra.mrb[32].mxu0 %v1041_v51  ;;  %v1002_v43 = vadd.f32 %v2292_v53, %v894_v39 }
 0x391   : > { %v2293_v55 = vpop.f32.mrb[22].mxu1  ;;  %v994_v58 = vadd.f32 %v993_v54, %v894_v39  ;;  %2367 = vmatpush3.bf16.msra.mxu0 %v2496_v22 }
 0x392   : > { %v1005_v56 = vadd.f32 %v2293_v55, %v894_v39  ;;  %v996_v57 = vpop.f32.mrb[23].mxu1  ;;  %2368 = vmatprep.subr.bf16.mxu0 %v2497_v23 }
 0x393   : > { %v997_v59 = vadd.f32 %v996_v57, %v894_v39 }
 0x394   : > { %v1043_v60 = vpack.c.bf16 %v1005_v56, %v1002_v43 }
 0x395   : > { %v1042_v61 = vpack.c.bf16 %v997_v59, %v994_v58  ;;  %2369 = vmatpush3.bf16.msra.mxu0 %v2497_v23 }
 0x396   : > { %2370 = vmatprep.subr.bf16.mxu0 %v2498_v24 }
 0x397   : > { %v2296_v62 = vpop.f32.mrb[24].mxu1  ;;  %2322 = vmatprep.mubr.bf16.mxu0 %v1042_v61 }
 0x398   : > { %v1009_v0 = vpop.f32.mrb[25].mxu1  ;;  %2323 = vmatmul.mubr.bf16.gmra.mrb[36].mxu0 %v1043_v60  ;;  %v1018_v2 = vadd.f32 %v2296_v62, %v894_v39 }
 0x399   : > { %v2297_v1 = vpop.f32.mrb[26].mxu1  ;;  %v1010_v5 = vadd.f32 %v1009_v0, %v894_v39  ;;  %2371 = vmatpush3.bf16.msra.mxu0 %v2498_v24 }
 0x39a   : > { %v1021_v3 = vadd.f32 %v2297_v1, %v894_v39  ;;  %v1012_v4 = vpop.f32.mrb[27].mxu1  ;;  %2372 = vmatprep.subr.bf16.mxu0 %v2499_v25 }
 0x39b   : > { %v1013_v6 = vadd.f32 %v1012_v4, %v894_v39 }
 0x39c   : > { %v1045_v7 = vpack.c.bf16 %v1021_v3, %v1018_v2 }
 0x39d   : > { %v1044_v8 = vpack.c.bf16 %v1013_v6, %v1010_v5  ;;  %2373 = vmatpush3.bf16.msra.mxu0 %v2499_v25 }
 0x39e   : > { %2374 = vmatprep.subr.bf16.mxu0 %v2500_v26 }
 0x39f   : > { %v2300_v9 = vpop.f32.mrb[28].mxu1  ;;  %2326 = vmatprep.mubr.bf16.mxu0 %v1044_v8 }
 0x3a0   : > { %v1025_v10 = vpop.f32.mrb[29].mxu1  ;;  %2327 = vmatmul.mubr.bf16.gmra.mrb[40].mxu0 %v1045_v7  ;;  %v1034_v63 = vadd.f32 %v2300_v9, %v894_v39 }
 0x3a1   : > { %v2301_v11 = vpop.f32.mrb[30].mxu1  ;;  %v1026_v14 = vadd.f32 %v1025_v10, %v894_v39  ;;  %2375 = vmatpush3.bf16.msra.mxu0 %v2500_v26 }
 0x3a2   : > { %v1037_v12 = vadd.f32 %v2301_v11, %v894_v39  ;;  %v1028_v13 = vpop.f32.mrb[31].mxu1 }
 0x3a3   : > { %v1029_v15 = vadd.f32 %v1028_v13, %v894_v39 }
 0x3a4   : > { %v1047_v16 = vpack.c.bf16 %v1037_v12, %v1034_v63 }
 0x3a5   : > { %v1046_v17 = vpack.c.bf16 %v1029_v15, %v1026_v14 }
 0x3a7   : > { %2330 = vmatprep.mubr.bf16.mxu0 %v1046_v17 }
 0x3a8   : > { %2331 = vmatmul.mubr.bf16.gmra.mrb[44].mxu0 %v1047_v16 }
 0x463   : > { %v2320_v29 = vpop.f32.mrb[32].mxu0 }
 0x464   : > { %v1160_v30 = vadd.f32 %v2320_v29, %v2810_v28  ;;  %v1151_v31 = vpop.f32.mrb[33].mxu0 }
 0x465   : > { %v1152_v32 = vadd.f32 %v1151_v31, %v2810_v28  ;;  %v2321_v20 = vpop.f32.mrb[34].mxu0 }
 0x466   : > { %v1216_v33 = vmul.f32 0.2, %v1160_v30  ;;  %v1163_v34 = vadd.f32 %v2321_v20, %v2810_v28  ;;  %v1154_v35 = vpop.f32.mrb[35].mxu0 }
 0x467   : > { %v1214_v36 = vmul.f32 0.2, %v1152_v32  ;;  %v1155_v37 = vadd.f32 %v1154_v35, %v2810_v28 }
 0x468   : > { %v1217_v38 = vmul.f32 0.2, %v1163_v34  ;;  %v1232_v41 = vmax.f32 %v1160_v30, %v1216_v33 }
 0x469   : > { %v1215_v39 = vmul.f32 0.2, %v1155_v37  ;;  %v1230_v45 = vmax.f32 %v1152_v32, %v1214_v36 }
 0x46a   : > { %v1233_v44 = vmax.f32 %v1163_v34, %v1217_v38 }
 0x46b   : > { %v1231_v46 = vmax.f32 %v1155_v37, %v1215_v39  ;;  %v2324_v47 = vpop.f32.mrb[36].mxu0  ;;  %v2501_v39 = vld [vmem:[%s2968_s2 + $0x168] sm:$0xff]  }
 0x46c   : > { %v1247_v48 = vpack.c.bf16 %v1233_v44, %v1232_v41  ;;  %v1176_v49 = vadd.f32 %v2324_v47, %v2810_v28  ;;  %v1167_v50 = vpop.f32.mrb[37].mxu0  ;;  %2376 = vmatprep.subr.bf16.mxu0 %v2501_v39  ;;  %v2503_v41 = vld [vmem:[%s2968_s2 + $0x178] sm:$0xff]   ;;  %v2504_v44 = vld [vmem:[%s2969_s3] sm:$0xff]  }
 0x46d   : > { %v1168_v51 = vadd.f32 %v1167_v50, %v2810_v28  ;;  %v2325_v52 = vpop.f32.mrb[38].mxu0  ;;  %v1246_v53 = vpack.c.bf16 %v1231_v46, %v1230_v45  ;;  %2377 = vmatpush3.bf16.msra.mxu0 %v2501_v39  ;;  %v2505_v45 = vld [vmem:[%s2969_s3 + $0x8] sm:$0xff]   ;;  %2430 = vmatprep.subr.bf16.mxu1 %v2504_v44  ;;  %v2846_v46 = vld [vmem:[%s2969_s3 + $0x10] sm:$0xff]   ;;  %v2852_v47 = vld [vmem:[%s2969_s3 + $0x18] sm:$0xff]  }
 0x46e   : > { %v1220_v54 = vmul.f32 0.2, %v1176_v49  ;;  %v1179_v55 = vadd.f32 %v2325_v52, %v2810_v28  ;;  %v1170_v43 = vpop.f32.mrb[39].mxu0 }
 0x46f   : > { %v1218_v56 = vmul.f32 0.2, %v1168_v51  ;;  %v1171_v57 = vadd.f32 %v1170_v43, %v2810_v28  ;;  %2350 = vmatprep.mubr.bf16.mxu1 %v1246_v53 }
 0x470   : > { %v1221_v58 = vmul.f32 0.2, %v1179_v55  ;;  %2351 = vmatmul.mubr.bf16.vlgmr.msra.gmra.mrb[32].mxu1 %v1247_v48  ;;  %v1236_v60 = vmax.f32 %v1176_v49, %v1220_v54  ;;  %v2859_v48 = vld [vmem:[%s2969_s3 + $0x20] sm:$0xff]   ;;  %v1273_v49 = vsub.s32 5, %v2643_v40 }
 0x471   : > { %v1219_v59 = vmul.f32 0.2, %v1171_v57  ;;  %v1234_v62 = vmax.f32 %v1168_v51, %v1218_v56  ;;  %2438 = vmatpush3.bf16.msra.mxu1 %v2504_v44 }
 0x472   : > { %v1237_v61 = vmax.f32 %v1179_v55, %v1221_v58  ;;  %2431 = vmatprep.subr.bf16.mxu1 %v2505_v45  ;;  %v2866_v50 = vrot.slane %v2649_v42, %v1273_v49 }
 0x473   : > { %v1235_v0 = vmax.f32 %v1171_v57, %v1219_v59  ;;  %v2328_v1 = vpop.f32.mrb[40].mxu0 }
 0x474   : > { %v1192_v2 = vadd.f32 %v2328_v1, %v2810_v28  ;;  %v1183_v3 = vpop.f32.mrb[41].mxu0  ;;  %v1249_v4 = vpack.c.bf16 %v1237_v61, %v1236_v60 }
 0x475   : > { %v1184_v5 = vadd.f32 %v1183_v3, %v2810_v28  ;;  %v2329_v6 = vpop.f32.mrb[42].mxu0  ;;  %v1248_v7 = vpack.c.bf16 %v1235_v0, %v1234_v62  ;;  %2439 = vmatpush3.bf16.msra.mxu1 %v2505_v45 }
 0x476   : > { %v1224_v8 = vmul.f32 0.2, %v1192_v2  ;;  %v1195_v9 = vadd.f32 %v2329_v6, %v2810_v28  ;;  %v1186_v10 = vpop.f32.mrb[43].mxu0  ;;  %2432 = vmatprep.subr.bf16.mxu1 %v2846_v46 }
 0x477   : > { %v1222_v11 = vmul.f32 0.2, %v1184_v5  ;;  %v1187_v63 = vadd.f32 %v1186_v10, %v2810_v28  ;;  %2354 = vmatprep.mubr.bf16.mxu1 %v1248_v7 }
 0x478   : > { %v1225_v12 = vmul.f32 0.2, %v1195_v9  ;;  %2355 = vmatmul.mubr.bf16.gmra.mrb[36].mxu1 %v1249_v4  ;;  %v1240_v14 = vmax.f32 %v1192_v2, %v1224_v8 }
 0x479   : > { %v1223_v13 = vmul.f32 0.2, %v1187_v63  ;;  %v1238_v16 = vmax.f32 %v1184_v5, %v1222_v11  ;;  %2440 = vmatpush3.bf16.msra.mxu1 %v2846_v46 }
 0x47a   : > { %v1241_v15 = vmax.f32 %v1195_v9, %v1225_v12  ;;  %2433 = vmatprep.subr.bf16.mxu1 %v2852_v47 }
 0x47b   : > { %v1239_v17 = vmax.f32 %v1187_v63, %v1223_v13  ;;  %v2332_v18 = vpop.f32.mrb[44].mxu0 }
 0x47c   : > { %v1208_v19 = vadd.f32 %v2332_v18, %v2810_v28  ;;  %v1199_v21 = vpop.f32.mrb[45].mxu0  ;;  %v1251_v22 = vpack.c.bf16 %v1241_v15, %v1240_v14 }
 0x47d   : > { %v1200_v23 = vadd.f32 %v1199_v21, %v2810_v28  ;;  %v2333_v24 = vpop.f32.mrb[46].mxu0  ;;  %v1250_v25 = vpack.c.bf16 %v1239_v17, %v1238_v16  ;;  %2441 = vmatpush3.bf16.msra.mxu1 %v2852_v47 }
 0x47e   : > { %v1228_v26 = vmul.f32 0.2, %v1208_v19  ;;  %v1211_v27 = vadd.f32 %v2333_v24, %v2810_v28  ;;  %v1202_v29 = vpop.f32.mrb[47].mxu0  ;;  %2434 = vmatprep.subr.bf16.mxu1 %v2859_v48 }
 0x47f   : > { %v1226_v30 = vmul.f32 0.2, %v1200_v23  ;;  %v1203_v31 = vadd.f32 %v1202_v29, %v2810_v28  ;;  %2358 = vmatprep.mubr.bf16.mxu1 %v1250_v25  ;;  %v2502_v28 = vld [vmem:[%s2968_s2 + $0x170] sm:$0xff]  }
 0x480   : > { %v1229_v32 = vmul.f32 0.2, %v1211_v27  ;;  %2359 = vmatmul.mubr.bf16.gmra.mrb[40].mxu1 %v1251_v22  ;;  %v1244_v33 = vmax.f32 %v1208_v19, %v1228_v26  ;;  %2378 = vmatprep.subr.bf16.mxu0 %v2502_v28 }
 0x481   : > { %v1227_v20 = vmul.f32 0.2, %v1203_v31  ;;  %v1242_v35 = vmax.f32 %v1200_v23, %v1226_v30  ;;  %2379 = vmatpush3.bf16.msra.mxu0 %v2502_v28  ;;  %2442 = vmatpush3.bf16.msra.mxu1 %v2859_v48 }
 0x482   : > { %v1245_v34 = vmax.f32 %v1211_v27, %v1229_v32  ;;  %2380 = vmatprep.subr.bf16.mxu0 %v2503_v41 }
 0x483   : > { %v1243_v36 = vmax.f32 %v1203_v31, %v1227_v20 }
 0x484   : > { %v1253_v37 = vpack.c.bf16 %v1245_v34, %v1244_v33 }
 0x485   : > { %v1252_v38 = vpack.c.bf16 %v1243_v36, %v1242_v35  ;;  %2381 = vmatpush3.bf16.msra.mxu0 %v2503_v41 }
 0x486   : > { %2398 = vmatprep.subr.bf16.mxu0 %v2504_v44 }
 0x487   : > { %2362 = vmatprep.mubr.bf16.mxu1 %v1252_v38 }
 0x488   : > { %2363 = vmatmul.mubr.bf16.gmra.mrb[44].mxu1 %v1253_v37 }
 0x543   : > { %v2352_v51 = vpop.f32.mrb[32].mxu1 }
 0x544   : > { %v1366_v52 = vadd.f32 %v2352_v51, %v2866_v50  ;;  %v1357_v53 = vpop.f32.mrb[33].mxu1 }
 0x545   : > { %v1358_v54 = vadd.f32 %v1357_v53, %v2866_v50  ;;  %v2353_v55 = vpop.f32.mrb[34].mxu1 }
 0x546   : > { %v1422_v43 = vmul.f32 0.2, %v1366_v52  ;;  %v1369_v56 = vadd.f32 %v2353_v55, %v2866_v50  ;;  %v1360_v57 = vpop.f32.mrb[35].mxu1 }
 0x547   : > { %v1420_v58 = vmul.f32 0.2, %v1358_v54  ;;  %v1361_v59 = vadd.f32 %v1360_v57, %v2866_v50 }
 0x548   : > { %v1423_v60 = vmul.f32 0.2, %v1369_v56  ;;  %v1438_v62 = vmax.f32 %v1366_v52, %v1422_v43 }
 0x549   : > { %v1421_v61 = vmul.f32 0.2, %v1361_v59  ;;  %v1436_v42 = vmax.f32 %v1358_v54, %v1420_v58 }
 0x54a   : > { %v1439_v0 = vmax.f32 %v1369_v56, %v1423_v60 }
 0x54b   : > { %v1437_v1 = vmax.f32 %v1361_v59, %v1421_v61  ;;  %v2356_v2 = vpop.f32.mrb[36].mxu1  ;;  %v2509_v61 = vld [vmem:[%s2969_s3 + $0x28] sm:$0xff]  }
 0x54c   : > { %v1453_v3 = vpack.c.bf16 %v1439_v0, %v1438_v62  ;;  %v1382_v4 = vadd.f32 %v2356_v2, %v2866_v50  ;;  %v1373_v5 = vpop.f32.mrb[37].mxu1  ;;  %2435 = vmatprep.subr.bf16.mxu1 %v2509_v61  ;;  %v1479_v62 = vsub.s32 6, %v2643_v40  ;;  %v2512_v0 = vld [vmem:[%s2970_s4] sm:$0x7f] }
 0x54d   : > { %v1374_v6 = vadd.f32 %v1373_v5, %v2866_v50  ;;  %v2357_v7 = vpop.f32.mrb[38].mxu1  ;;  %v1452_v8 = vpack.c.bf16 %v1437_v1, %v1436_v42  ;;  %2443 = vmatpush3.bf16.msra.mxu1 %v2509_v61 }
 0x54e   : > { %v1426_v9 = vmul.f32 0.2, %v1382_v4  ;;  %v1385_v10 = vadd.f32 %v2357_v7, %v2866_v50  ;;  %v1376_v11 = vpop.f32.mrb[39].mxu1  ;;  %v2903_v42 = vrot.slane %v2512_v0, %v1479_v62 }
 0x54f   : > { %v1424_v63 = vmul.f32 0.2, %v1374_v6  ;;  %v1377_v12 = vadd.f32 %v1376_v11, %v2866_v50  ;;  %2382 = vmatprep.mubr.bf16.mxu0 %v1452_v8 }
 0x550   : > { %v1427_v13 = vmul.f32 0.2, %v1385_v10  ;;  %2383 = vmatmul.mubr.bf16.vlgmr.msra.gmra.mrb[48].mxu0 %v1453_v3  ;;  %v1442_v15 = vmax.f32 %v1382_v4, %v1426_v9 }
 0x551   : > { %v1425_v14 = vmul.f32 0.2, %v1377_v12  ;;  %2399 = vmatpush3.bf16.msra.mxu0 %v2504_v44  ;;  %v1440_v17 = vmax.f32 %v1374_v6, %v1424_v63 }
 0x552   : > { %v1443_v16 = vmax.f32 %v1385_v10, %v1427_v13  ;;  %2400 = vmatprep.subr.bf16.mxu0 %v2505_v45 }
 0x553   : > { %v1441_v18 = vmax.f32 %v1377_v12, %v1425_v14  ;;  %v2360_v19 = vpop.f32.mrb[40].mxu1 }
 0x554   : > { %v1398_v21 = vadd.f32 %v2360_v19, %v2866_v50  ;;  %v1389_v22 = vpop.f32.mrb[41].mxu1  ;;  %v1455_v23 = vpack.c.bf16 %v1443_v16, %v1442_v15 }
 0x555   : > { %v1390_v24 = vadd.f32 %v1389_v22, %v2866_v50  ;;  %v2361_v25 = vpop.f32.mrb[42].mxu1  ;;  %v1454_v26 = vpack.c.bf16 %v1441_v18, %v1440_v17  ;;  %2401 = vmatpush3.bf16.msra.mxu0 %v2505_v45 }
 0x556   : > { %v1430_v27 = vmul.f32 0.2, %v1398_v21  ;;  %v1401_v29 = vadd.f32 %v2361_v25, %v2866_v50  ;;  %v1392_v30 = vpop.f32.mrb[43].mxu1  ;;  %2402 = vmatprep.subr.bf16.mxu0 %v2846_v46 }
 0x557   : > { %v1428_v31 = vmul.f32 0.2, %v1390_v24  ;;  %v1393_v32 = vadd.f32 %v1392_v30, %v2866_v50  ;;  %2386 = vmatprep.mubr.bf16.mxu0 %v1454_v26 }
 0x558   : > { %v1431_v20 = vmul.f32 0.2, %v1401_v29  ;;  %2387 = vmatmul.mubr.bf16.gmra.mrb[52].mxu0 %v1455_v23  ;;  %v1446_v34 = vmax.f32 %v1398_v21, %v1430_v27 }
 0x559   : > { %v1429_v33 = vmul.f32 0.2, %v1393_v32  ;;  %2403 = vmatpush3.bf16.msra.mxu0 %v2846_v46  ;;  %v1444_v36 = vmax.f32 %v1390_v24, %v1428_v31 }
 0x55a   : > { %v1447_v35 = vmax.f32 %v1401_v29, %v1431_v20  ;;  %2404 = vmatprep.subr.bf16.mxu0 %v2852_v47 }
 0x55b   : > { %v1445_v37 = vmax.f32 %v1393_v32, %v1429_v33  ;;  %v2364_v38 = vpop.f32.mrb[44].mxu1 }
 0x55c   : > { %v1414_v39 = vadd.f32 %v2364_v38, %v2866_v50  ;;  %v1405_v28 = vpop.f32.mrb[45].mxu1  ;;  %v1457_v41 = vpack.c.bf16 %v1447_v35, %v1446_v34 }
 0x55d   : > { %v1406_v44 = vadd.f32 %v1405_v28, %v2866_v50  ;;  %v2365_v45 = vpop.f32.mrb[46].mxu1  ;;  %v1456_v49 = vpack.c.bf16 %v1445_v37, %v1444_v36  ;;  %2405 = vmatpush3.bf16.msra.mxu0 %v2852_v47 }
 0x55e   : > { %v1434_v51 = vmul.f32 0.2, %v1414_v39  ;;  %v1417_v46 = vadd.f32 %v2365_v45, %v2866_v50  ;;  %v1408_v52 = vpop.f32.mrb[47].mxu1  ;;  %2406 = vmatprep.subr.bf16.mxu0 %v2859_v48 }
 0x55f   : > { %v1432_v53 = vmul.f32 0.2, %v1406_v44  ;;  %v1409_v54 = vadd.f32 %v1408_v52, %v2866_v50  ;;  %2390 = vmatprep.mubr.bf16.mxu0 %v1456_v49  ;;  %v2511_v50 = vld [vmem:[%s2969_s3 + $0x38] sm:$0xff]  }
 0x560   : > { %v1435_v55 = vmul.f32 0.2, %v1417_v46  ;;  %2391 = vmatmul.mubr.bf16.gmra.mrb[56].mxu0 %v1457_v41  ;;  %v1450_v56 = vmax.f32 %v1414_v39, %v1434_v51 }
 0x561   : > { %v1433_v43 = vmul.f32 0.2, %v1409_v54  ;;  %2407 = vmatpush3.bf16.msra.mxu0 %v2859_v48  ;;  %v1448_v58 = vmax.f32 %v1406_v44, %v1432_v53  ;;  %v2510_v48 = vld [vmem:[%s2969_s3 + $0x30] sm:$0xff]  }
 0x562   : > { %v1451_v57 = vmax.f32 %v1417_v46, %v1435_v55  ;;  %2408 = vmatprep.subr.bf16.mxu0 %v2509_v61  ;;  %2436 = vmatprep.subr.bf16.mxu1 %v2510_v48 }
 0x563   : > { %v1449_v59 = vmax.f32 %v1409_v54, %v1433_v43  ;;  %2444 = vmatpush3.bf16.msra.mxu1 %v2510_v48 }
 0x564   : > { %v1459_v47 = vpack.c.bf16 %v1451_v57, %v1450_v56  ;;  %2437 = vmatprep.subr.bf16.mxu1 %v2511_v50 }
 0x565   : > { %v1458_v60 = vpack.c.bf16 %v1449_v59, %v1448_v58  ;;  %2409 = vmatpush3.bf16.msra.mxu0 %v2509_v61 }
 0x566   : > { %2410 = vmatprep.subr.bf16.mxu0 %v2510_v48 }
 0x567   : > { %2394 = vmatprep.mubr.bf16.mxu0 %v1458_v60  ;;  %2445 = vmatpush3.bf16.msra.mxu1 %v2511_v50 }
 0x568   : > { %2395 = vmatmul.mubr.bf16.gmra.mrb[60].mxu0 %v1459_v47 }
 0x569   : > { %2411 = vmatpush3.bf16.msra.mxu0 %v2510_v48 }
 0x56a   : > { %2412 = vmatprep.subr.bf16.mxu0 %v2511_v50 }
 0x56d   : > { %2413 = vmatpush3.bf16.msra.mxu0 %v2511_v50 }
 0x623   : > { %v2384_v1 = vpop.f32.mrb[48].mxu0 }
 0x624   : > { %v1572_v2 = vadd.f32 %v2384_v1, %v2903_v42  ;;  %v1563_v3 = vpop.f32.mrb[49].mxu0 }
 0x625   : > { %v1564_v4 = vadd.f32 %v1563_v3, %v2903_v42  ;;  %v2385_v5 = vpop.f32.mrb[50].mxu0 }
 0x626   : > { %v1628_v6 = vmul.f32 0.2, %v1572_v2  ;;  %v1575_v7 = vadd.f32 %v2385_v5, %v2903_v42  ;;  %v1566_v8 = vpop.f32.mrb[51].mxu0 }
 0x627   : > { %v1626_v9 = vmul.f32 0.2, %v1564_v4  ;;  %v1567_v40 = vadd.f32 %v1566_v8, %v2903_v42 }
 0x628   : > { %v1629_v10 = vmul.f32 0.2, %v1575_v7  ;;  %v1644_v63 = vmax.f32 %v1572_v2, %v1628_v6 }
 0x629   : > { %v1627_v11 = vmul.f32 0.2, %v1567_v40  ;;  %v1642_v13 = vmax.f32 %v1564_v4, %v1626_v9 }
 0x62a   : > { %v1645_v12 = vmax.f32 %v1575_v7, %v1629_v10 }
 0x62b   : > { %v1643_v14 = vmax.f32 %v1567_v40, %v1627_v11  ;;  %v2388_v15 = vpop.f32.mrb[52].mxu0  ;;  %v2053_v40 = vld [vmem:[%s2971_s5] ss:$0 sm:$0xff] }
 0x62c   : > { %v1659_v16 = vpack.c.bf16 %v1645_v12, %v1644_v63  ;;  %v1588_v17 = vadd.f32 %v2388_v15, %v2903_v42  ;;  %v1579_v18 = vpop.f32.mrb[53].mxu0 }
 0x62d   : > { %v1580_v19 = vadd.f32 %v1579_v18, %v2903_v42  ;;  %v2389_v21 = vpop.f32.mrb[54].mxu0  ;;  %v1658_v22 = vpack.c.bf16 %v1643_v14, %v1642_v13 }
 0x62e   : > { %v1632_v23 = vmul.f32 0.2, %v1588_v17  ;;  %v1591_v24 = vadd.f32 %v2389_v21, %v2903_v42  ;;  %v1582_v25 = vpop.f32.mrb[55].mxu0 }
 0x62f   : > { %v1630_v26 = vmul.f32 0.2, %v1580_v19  ;;  %v1583_v27 = vadd.f32 %v1582_v25, %v2903_v42  ;;  %2414 = vmatprep.mubr.bf16.mxu0 %v1658_v22 }
 0x630   : > { %v1633_v29 = vmul.f32 0.2, %v1591_v24  ;;  %2415 = vmatmul.mubr.bf16.vlgmr.msra.gmra.mrb[64].mxu0 %v1659_v16  ;;  %v1648_v31 = vmax.f32 %v1588_v17, %v1632_v23 }
 0x631   : > { %v1631_v30 = vmul.f32 0.2, %v1583_v27  ;;  %v1646_v20 = vmax.f32 %v1580_v19, %v1630_v26 }
 0x632   : > { %v1649_v32 = vmax.f32 %v1591_v24, %v1633_v29 }
 0x633   : > { %v1647_v33 = vmax.f32 %v1583_v27, %v1631_v30  ;;  %v2392_v34 = vpop.f32.mrb[56].mxu0 }
 0x634   : > { %v1661_v35 = vpack.c.bf16 %v1649_v32, %v1648_v31  ;;  %v1604_v36 = vadd.f32 %v2392_v34, %v2903_v42  ;;  %v1595_v37 = vpop.f32.mrb[57].mxu0 }
 0x635   : > { %v1596_v38 = vadd.f32 %v1595_v37, %v2903_v42  ;;  %v2393_v39 = vpop.f32.mrb[58].mxu0  ;;  %v1660_v28 = vpack.c.bf16 %v1647_v33, %v1646_v20 }
 0x636   : > { %v1636_v41 = vmul.f32 0.2, %v1604_v36  ;;  %v1607_v44 = vadd.f32 %v2393_v39, %v2903_v42  ;;  %v1598_v45 = vpop.f32.mrb[59].mxu0 }
 0x637   : > { %v1634_v49 = vmul.f32 0.2, %v1596_v38  ;;  %v1599_v51 = vadd.f32 %v1598_v45, %v2903_v42  ;;  %2418 = vmatprep.mubr.bf16.mxu1 %v1660_v28 }
 0x638   : > { %v1637_v46 = vmul.f32 0.2, %v1607_v44  ;;  %2419 = vmatmul.mubr.bf16.vlgmr.msra.gmra.mrb[48].mxu1 %v1661_v35  ;;  %v1652_v53 = vmax.f32 %v1604_v36, %v1636_v41 }
 0x639   : > { %v1635_v52 = vmul.f32 0.2, %v1599_v51  ;;  %v1650_v55 = vmax.f32 %v1596_v38, %v1634_v49 }
 0x63a   : > { %v1653_v54 = vmax.f32 %v1607_v44, %v1637_v46 }
 0x63b   : > { %v1651_v43 = vmax.f32 %v1599_v51, %v1635_v52  ;;  %v2396_v56 = vpop.f32.mrb[60].mxu0 }
 0x63c   : > { %v1620_v57 = vadd.f32 %v2396_v56, %v2903_v42  ;;  %v1611_v58 = vpop.f32.mrb[61].mxu0  ;;  %v1663_v59 = vpack.c.bf16 %v1653_v54, %v1652_v53 }
 0x63d   : > { %v1612_v47 = vadd.f32 %v1611_v58, %v2903_v42  ;;  %v2397_v60 = vpop.f32.mrb[62].mxu0  ;;  %v1662_v61 = vpack.c.bf16 %v1651_v43, %v1650_v55 }
 0x63e   : > { %v1640_v48 = vmul.f32 0.2, %v1620_v57  ;;  %v1623_v50 = vadd.f32 %v2397_v60, %v2903_v42  ;;  %v1614_v62 = vpop.f32.mrb[63].mxu0 }
 0x63f   : > { %v1638_v0 = vmul.f32 0.2, %v1612_v47  ;;  %v1615_v1 = vadd.f32 %v1614_v62, %v2903_v42  ;;  %2422 = vmatprep.mubr.bf16.mxu1 %v1662_v61 }
 0x640   : > { %v1641_v2 = vmul.f32 0.2, %v1623_v50  ;;  %2423 = vmatmul.mubr.bf16.gmra.mrb[52].mxu1 %v1663_v59  ;;  %v1656_v4 = vmax.f32 %v1620_v57, %v1640_v48 }
 0x641   : > { %v1639_v3 = vmul.f32 0.2, %v1615_v1  ;;  %v1654_v6 = vmax.f32 %v1612_v47, %v1638_v0 }
 0x642   : > { %v1657_v5 = vmax.f32 %v1623_v50, %v1641_v2 }
 0x643   : > { %v1655_v7 = vmax.f32 %v1615_v1, %v1639_v3 }
 0x644   : > { %v1665_v8 = vpack.c.bf16 %v1657_v5, %v1656_v4 }
 0x645   : > { %v1664_v9 = vpack.c.bf16 %v1655_v7, %v1654_v6 }
 0x647   : > { %2426 = vmatprep.mubr.bf16.mxu1 %v1664_v9 }
 0x648   : > { %2427 = vmatmul.mubr.bf16.gmra.mrb[56].mxu1 %v1665_v8 }
 0x703   : > { %v2416_v42 = vpop.f32.mrb[64].mxu0 }
 0x704   : > { %v1780_v10 = vadd.f32 %v2416_v42, %v2053_v40  ;;  %v1771_v11 = vpop.f32.mrb[65].mxu0 }
 0x705   : > { %v1772_v63 = vadd.f32 %v2053_v40, %v1771_v11  ;;  %v2417_v12 = vpop.f32.mrb[66].mxu0 }
 0x706   : > { %1836 = vst.msk [vmem:[%s2929_s24 + $0x10] sm:$0xff] %vm301_vm0, %v1780_v10  ;;  %v1783_v13 = vadd.f32 %v2417_v12, %v2053_v40  ;;  %v1774_v14 = vpop.f32.mrb[67].mxu0 }
 0x707   : > { %1834 = vst.msk [vmem:[%s2929_s24] sm:$0xff] %vm301_vm0, %v1772_v63  ;;  %v1775_v15 = vadd.f32 %v2053_v40, %v1774_v14 }
 0x708   : > { %1837 = vst.msk [vmem:[%s2929_s24 + $0x18] sm:$0xff] %vm301_vm0, %v1783_v13 }
 0x709   : > { %1835 = vst.msk [vmem:[%s2929_s24 + $0x8] sm:$0xff] %vm301_vm0, %v1775_v15 }
 0x70b   : > { %v2420_v16 = vpop.f32.mrb[48].mxu1 }
 0x70c   : > { %v1796_v17 = vadd.f32 %v2420_v16, %v2053_v40  ;;  %v1787_v18 = vpop.f32.mrb[49].mxu1 }
 0x70d   : > { %v1788_v19 = vadd.f32 %v2053_v40, %v1787_v18  ;;  %v2421_v21 = vpop.f32.mrb[50].mxu1 }
 0x70e   : > { %1840 = vst.msk [vmem:[%s2929_s24 + $0x30] sm:$0xff] %vm301_vm0, %v1796_v17  ;;  %v1799_v22 = vadd.f32 %v2421_v21, %v2053_v40  ;;  %v1790_v23 = vpop.f32.mrb[51].mxu1 }
 0x70f   : > { %1838 = vst.msk [vmem:[%s2929_s24 + $0x20] sm:$0xff] %vm301_vm0, %v1788_v19  ;;  %v1791_v24 = vadd.f32 %v2053_v40, %v1790_v23 }
 0x710   : > { %1841 = vst.msk [vmem:[%s2929_s24 + $0x38] sm:$0xff] %vm301_vm0, %v1799_v22 }
 0x711   : > { %1839 = vst.msk [vmem:[%s2929_s24 + $0x28] sm:$0xff] %vm301_vm0, %v1791_v24 }
 0x713   : > { %v2424_v25 = vpop.f32.mrb[52].mxu1 }
 0x714   : > { %v1812_v26 = vadd.f32 %v2424_v25, %v2053_v40  ;;  %v1803_v27 = vpop.f32.mrb[53].mxu1 }
 0x715   : > { %v1804_v29 = vadd.f32 %v2053_v40, %v1803_v27  ;;  %v2425_v30 = vpop.f32.mrb[54].mxu1 }
 0x716   : > { %1844 = vst.msk [vmem:[%s2929_s24 + $0x50] sm:$0xff] %vm301_vm0, %v1812_v26  ;;  %v1815_v31 = vadd.f32 %v2425_v30, %v2053_v40  ;;  %v1806_v32 = vpop.f32.mrb[55].mxu1 }
 0x717   : > { %1842 = vst.msk [vmem:[%s2929_s24 + $0x40] sm:$0xff] %vm301_vm0, %v1804_v29  ;;  %v1807_v20 = vadd.f32 %v2053_v40, %v1806_v32 }
 0x718   : > { %1845 = vst.msk [vmem:[%s2929_s24 + $0x58] sm:$0xff] %vm301_vm0, %v1815_v31 }
 0x719   : > { %1843 = vst.msk [vmem:[%s2929_s24 + $0x48] sm:$0xff] %vm301_vm0, %v1807_v20 }
 0x71b   : > { %v2428_v33 = vpop.f32.mrb[56].mxu1 }
 0x71c   : > { %v1828_v34 = vadd.f32 %v2428_v33, %v2053_v40  ;;  %v1819_v35 = vpop.f32.mrb[57].mxu1 }
 0x71d   : > { %v1820_v36 = vadd.f32 %v2053_v40, %v1819_v35  ;;  %v2429_v37 = vpop.f32.mrb[58].mxu1 }
 0x71e   : > { %1848 = vst.msk [vmem:[%s2929_s24 + $0x70] sm:$0xff] %vm301_vm0, %v1828_v34  ;;  %v1831_v38 = vadd.f32 %v2429_v37, %v2053_v40  ;;  %v1822_v39 = vpop.f32.mrb[59].mxu1 }
 0x71f   : > { %1846 = vst.msk [vmem:[%s2929_s24 + $0x60] sm:$0xff] %vm301_vm0, %v1820_v36  ;;  %v1823_v28 = vadd.f32 %v2053_v40, %v1822_v39 }
 0x720   : > { %1849 = vst.msk [vmem:[%s2929_s24 + $0x78] sm:$0xff] %vm301_vm0, %v1831_v38 }
 0x721   : > { %1847 = vst.msk [vmem:[%s2929_s24 + $0x68] sm:$0xff] %vm301_vm0, %v1823_v28 }
 0x722 PF: > { %s16_s21 = sadd.s32 1, %s2519_s21  }
 0x723   : > { %p13_p4 = scmp.ge.s32.totalorder %s16_s21, 4  }
 0x725   :  { %15 = sbr.rel (!%p13_p4) target bundleno = 1 (0x1), region = 79 }

</bundles_post_ra>
